<compile_context>
chip_gen: v6e
topology: v6e:2x2x1
jax: 0.10.0
libtpu: 0.0.40
codegen_flags: <defaults>
</compile_context>

<pallas_src>
import functools

import jax
import jax.numpy as jnp
from jax.experimental import pallas as pl
from jax.experimental.pallas import tpu as pltpu

LANE = 128  # lane-dense output-channel padding


# ----------------------------- Pallas kernel ------------------------------ #

def _conv_tap_kernel(z_ref, w_ref, b_ref, o_ref, *, tr, wo):
    """Fused 3x3/stride-2 conv tile.

    z_ref: (1, tr+1, wo+1, 4C) bf16 space-to-depth input tile (with halo)
    w_ref: (4, 4C, OPAD)       bf16 per-tap weight matrices
    b_ref: (1, OPAD)           f32 bias row (lane-padded)
    o_ref: (1, tr*wo, OPAD)    f32 lane-dense output tile

    The 3x3/stride-2 conv == 2x2/stride-1 conv over the space-to-depth tensor,
    so the im2col never touches HBM: each tap is just a shifted slice of the
    VMEM tile, matmul'd on the MXU (bf16 x bf16 -> f32 accumulate).
    """
    c4 = z_ref.shape[-1]
    opad = o_ref.shape[-1]
    zt = z_ref[0]                                    # (tr+1, wo+1, c4)
    acc = jnp.zeros((tr * wo, opad), jnp.float32)
    for dy in range(2):
        for dx in range(2):
            zv = zt[dy:dy + tr, dx:dx + wo, :]       # shifted tap view
            zm = zv.reshape(tr * wo, c4)
            acc = acc + jnp.dot(zm, w_ref[2 * dy + dx],
                                preferred_element_type=jnp.float32)
    o_ref[0] = jnp.maximum(acc + b_ref[...], 0.0).astype(o_ref.dtype)


def conv3x3_s2_relu_pallas(x_nhwc, w2, b_pad, cout, *, target_m=512):
    """3x3 conv, stride 2, pad 1, + bias + ReLU.  NHWC in, NHWC f32 out."""
    B, H, W, C = x_nhwc.shape
    Ho = (H - 1) // 2 + 1          # = (H + 2*pad - k)//s + 1 for k=3,s=2,pad=1
    Wo = (W - 1) // 2 + 1

    # ---- glue (XLA): zero-pad + space-to-depth, bf16 (~1x input copy) ----
    Hp, Wp = 2 * (Ho + 1), 2 * (Wo + 1)
    xp = jnp.pad(x_nhwc.astype(jnp.bfloat16),
                 ((0, 0), (1, Hp - H - 1), (1, Wp - W - 1), (0, 0)))
    C4 = 4 * C
    z = (xp.reshape(B, Ho + 1, 2, Wo + 1, 2, C)
           .transpose(0, 1, 3, 2, 4, 5)
           .reshape(B, Ho + 1, Wo + 1, C4))

    # ---- row tiles with a 1-row halo so the grid pipelines over M ----
    tr = max(1, min(Ho, target_m // max(Wo, 1)))
    while Ho % tr:
        tr -= 1
    T = Ho // tr
    zt = jnp.stack([z[:, t * tr:t * tr + tr + 1] for t in range(T)], axis=1)
    zt = zt.reshape(B * T, tr + 1, Wo + 1, C4)

    TM = tr * Wo
    OPAD = b_pad.shape[-1]

    kernel = functools.partial(_conv_tap_kernel, tr=tr, wo=Wo)
    out = pl.pallas_call(
        kernel,
        out_shape=jax.ShapeDtypeStruct((B * T, TM, OPAD), jnp.float32),
        grid=(B * T,),
        in_specs=[
            pl.BlockSpec((1, tr + 1, Wo + 1, C4), lambda i: (i, 0, 0, 0)),
            pl.BlockSpec((4, C4, OPAD), lambda i: (0, 0, 0)),
            pl.BlockSpec((1, OPAD), lambda i: (0, 0)),
        ],
        out_specs=pl.BlockSpec((1, TM, OPAD), lambda i: (i, 0, 0)),
        compiler_params=pltpu.CompilerParams(
            dimension_semantics=("parallel",)),
        cost_estimate=pl.CostEstimate(
            flops=int(2 * B * Ho * Wo * 9 * C * cout),
            transcendentals=0,
            bytes_accessed=int(zt.size * 2 + w2.size * 2
                               + b_pad.size * 4 + B * T * TM * OPAD * 4)),
    )(zt, w2, b_pad)

    # un-pad lanes, back to (B, Ho, Wo, cout) NHWC
    return out.reshape(B, Ho, Wo, OPAD)[..., :cout]


# ------------------------------- params ------------------------------------ #

def init_backbone_params(key):
    """Deterministic synthetic 'ResNet-like' backbone: 4 stride-2 conv layers."""
    chans = [3, 8, 16, 32, 64]                 # num_channels = 64
    params = []
    for i in range(4):
        key, k1, k2 = jax.random.split(key, 3)
        cin, cout = chans[i], chans[i + 1]
        w = jax.random.normal(k1, (cout, cin, 3, 3), jnp.float32) * (2.0 / (cin * 9)) ** 0.5
        b = jax.random.normal(k2, (cout,), jnp.float32) * 0.01
        params.append((w, b))
    return params


def prepare_params(raw_params, opad=LANE):
    """One-time weight prep (hoisted out of the forward path).

    OIHW f32 -> per-tap (4, 4*Cin, OPAD) bf16 matrices matching the
    space-to-depth channel order (py, px, c), plus a lane-padded f32 bias row.
    Taps with ky==3 or kx==3 get zero weights (they only ever touch pad rows).
    """
    prepared = []
    for (w, b) in raw_params:
        O, C, _, _ = w.shape
        w_t = jnp.transpose(w, (2, 3, 1, 0))                    # (ky,kx,C,O)
        w_t = jnp.pad(w_t, ((0, 1), (0, 1), (0, 0), (0, 0)))    # -> (4,4,C,O)
        w_t = w_t.reshape(2, 2, 2, 2, C, O)                     # (dy,py,dx,px,C,O)
        w_t = jnp.transpose(w_t, (0, 2, 1, 3, 4, 5))            # (dy,dx,py,px,C,O)
        w2 = w_t.reshape(4, 4 * C, O)
        w2 = jnp.pad(w2, ((0, 0), (0, 0), (0, opad - O))).astype(jnp.bfloat16)
        b_pad = jnp.pad(b, (0, opad - O)).reshape(1, opad).astype(jnp.float32)
        prepared.append((w2, b_pad, O))
    return prepared


# ------------------------------- forward ----------------------------------- #

def interpolate_mask_nearest(mask_bhw, out_hw):
    """F.interpolate(m[None].float(), size=(h,w)).to(bool)[0], mode='nearest'."""
    B, H, W = mask_bhw.shape
    h, w = out_hw
    rows = (jnp.arange(h) * H) // h        # floor(i * H / h) -- PyTorch nearest
    cols = (jnp.arange(w) * W) // w
    return mask_bhw[:, rows, :][:, :, cols]


def backbone_base_forward(tensors_nchw, mask, prepared_params,
                          return_interm_layers=True, target_m=512):
    """Mirrors BackboneBase.forward on a NestedTensor (tensors, mask)."""
    # NOTE: requires_grad_(False) in __init__ only affects training; no-op here.
    x = jnp.transpose(tensors_nchw, (0, 2, 3, 1))   # NCHW -> NHWC, once
    feats_nhwc = []
    for (w2, b_pad, cout) in prepared_params:       # layer1 .. layer4, NHWC
        x = conv3x3_s2_relu_pallas(x, w2, b_pad, cout, target_m=target_m)
        feats_nhwc.append(x)
    # TODO(synk): layers 2-4 are tiny; fuse them into one pallas_call with
    # VMEM-resident activations to save launches and HBM round-trips.

    if return_interm_layers:
        selected = {'0': feats_nhwc[0], '1': feats_nhwc[1],
                    '2': feats_nhwc[2], '3': feats_nhwc[3]}
    else:
        selected = {'0': feats_nhwc[3]}

    out = {}
    for name, xf in selected.items():
        x_nchw = jnp.transpose(xf, (0, 3, 1, 2))    # back to NCHW interface
        m = interpolate_mask_nearest(mask, x_nchw.shape[-2:])
        out[name] = (x_nchw, m)                     # NestedTensor(x, mask)
    return out


# --------------------------------- main ------------------------------------ #

if __name__ == "__main__":
    key = jax.random.PRNGKey(0)
    kx, kp = jax.random.split(key)

    B, C, H, W = 2, 3, 32, 32
    x = jax.random.normal(kx, (B, C, H, W), jnp.float32)
    # DETR-style padding mask: True where the image is padded
    mask = jnp.zeros((B, H, W), jnp.bool_)
    mask = mask.at[0, :, 24:].set(True)
    mask = mask.at[1, 28:, :].set(True)

    raw_params = init_backbone_params(kp)
    params = prepare_params(raw_params)

    # target_m=128 so layer1 exercises the multi-row-tile (halo) pipeline even
    # at this small test resolution; at DETR resolutions keep the default 512+.
    fwd = jax.jit(lambda xx, mm: backbone_base_forward(
        xx, mm, params, return_interm_layers=True, target_m=128))
    out = fwd(x, mask)
    jax.block_until_ready(out)

    # ---- sanity check vs. lax.conv reference (same bf16 operand rounding) ----
    def ref_forward(x_nchw, raw):
        h = x_nchw
        feats = []
        for (w, b) in raw:
            hb = h.astype(jnp.bfloat16).astype(jnp.float32)
            wb = w.astype(jnp.bfloat16).astype(jnp.float32)
            y = jax.lax.conv_general_dilated(
                hb, wb, window_strides=(2, 2), padding=((1, 1), (1, 1)),
                dimension_numbers=('NCHW', 'OIHW', 'NCHW'))
            h = jnp.maximum(y + b[None, :, None, None], 0.0)
            feats.append(h)
        return feats

    refs = ref_forward(x, raw_params)
    exp_hw = [(16, 16), (8, 8), (4, 4), (2, 2)]
    exp_c = [8, 16, 32, 64]
    for i, name in enumerate(['0', '1', '2', '3']):
        f, m = out[name]
        assert f.shape == refs[i].shape == (B, exp_c[i]) + exp_hw[i], f.shape
        err = float(jnp.max(jnp.abs(f - refs[i])))
        assert err < 2e-2, f"layer {name} max abs err {err}"
        assert m.shape == (B,) + exp_hw[i] and m.dtype == jnp.bool_

    print("KERNEL_OK")
</pallas_src>

<mosaic_0001>
module attributes {stable_mosaic.version = 11 : i64} {
  func.func @_conv_tap_kernel(%arg0: i32, %arg1: memref<1x9x17x12xbf16, #tpu.memory_space<vmem>>, %arg2: memref<4x12x128xbf16, #tpu.memory_space<vmem>>, %arg3: memref<1x128xf32, #tpu.memory_space<vmem>>, %arg4: memref<1x128x128xf32, #tpu.memory_space<vmem>>) attributes {dimension_semantics = [#tpu.dimension_semantics<parallel>], iteration_bounds = array<i64: 4>, scalar_prefetch = 0 : i64, scratch_operands = 0 : i64, tpu.core_type = #tpu.core_type<tc>, window_params = [{transform_indices = @transform_0, window_bounds = array<i64: 1, 9, 17, 12>}, {pipeline_mode = #tpu.pipeline_mode<synchronous>, transform_indices = @transform_1, window_bounds = array<i64: 4, 12, 128>}, {pipeline_mode = #tpu.pipeline_mode<synchronous>, transform_indices = @transform_2, window_bounds = array<i64: 1, 128>}, {transform_indices = @transform_3, window_bounds = array<i64: 1, 128, 128>}]} {
    %c0 = arith.constant 0 : index
    %c0_0 = arith.constant 0 : index
    %c0_1 = arith.constant 0 : index
    %c0_2 = arith.constant 0 : index
    %0 = vector.load %arg1[%c0, %c0_0, %c0_1, %c0_2] : memref<1x9x17x12xbf16, #tpu.memory_space<vmem>>, vector<1x9x17x12xbf16>
    %1 = vector.shape_cast %0 : vector<1x9x17x12xbf16> to vector<9x17x12xbf16>
    %cst = arith.constant 0.000000e+00 : f32
    %2 = vector.broadcast %cst : f32 to vector<128x128xf32>
    %3 = vector.extract_strided_slice %1 {offsets = [0, 0, 0], sizes = [8, 16, 12], strides = [1, 1, 1]} : vector<9x17x12xbf16> to vector<8x16x12xbf16>
    %4 = vector.shape_cast %3 : vector<8x16x12xbf16> to vector<128x12xbf16>
    %c0_3 = arith.constant 0 : index
    %c0_4 = arith.constant 0 : index
    %c0_5 = arith.constant 0 : index
    %5 = vector.load %arg2[%c0_3, %c0_4, %c0_5] : memref<4x12x128xbf16, #tpu.memory_space<vmem>>, vector<1x12x128xbf16>
    %6 = vector.shape_cast %5 : vector<1x12x128xbf16> to vector<12x128xbf16>
    %cst_6 = arith.constant dense<0.000000e+00> : vector<128x128xf32>
    %7 = tpu.matmul %4, %6, %cst_6 {dimension_numbers = #tpu.dot_dimension_numbers<[1], [0], [0], [1], [0, 0, 1, 1], [], []>} : vector<128x12xbf16>, vector<12x128xbf16>, vector<128x128xf32> -> vector<128x128xf32>
    %8 = arith.addf %2, %7 : vector<128x128xf32>
    %9 = vector.extract_strided_slice %1 {offsets = [0, 1, 0], sizes = [8, 16, 12], strides = [1, 1, 1]} : vector<9x17x12xbf16> to vector<8x16x12xbf16>
    %10 = vector.shape_cast %9 : vector<8x16x12xbf16> to vector<128x12xbf16>
    %c1 = arith.constant 1 : index
    %c0_7 = arith.constant 0 : index
    %c0_8 = arith.constant 0 : index
    %11 = vector.load %arg2[%c1, %c0_7, %c0_8] : memref<4x12x128xbf16, #tpu.memory_space<vmem>>, vector<1x12x128xbf16>
    %12 = vector.shape_cast %11 : vector<1x12x128xbf16> to vector<12x128xbf16>
    %cst_9 = arith.constant dense<0.000000e+00> : vector<128x128xf32>
    %13 = tpu.matmul %10, %12, %cst_9 {dimension_numbers = #tpu.dot_dimension_numbers<[1], [0], [0], [1], [0, 0, 1, 1], [], []>} : vector<128x12xbf16>, vector<12x128xbf16>, vector<128x128xf32> -> vector<128x128xf32>
    %14 = arith.addf %8, %13 : vector<128x128xf32>
    %15 = vector.extract_strided_slice %1 {offsets = [1, 0, 0], sizes = [8, 16, 12], strides = [1, 1, 1]} : vector<9x17x12xbf16> to vector<8x16x12xbf16>
    %16 = vector.shape_cast %15 : vector<8x16x12xbf16> to vector<128x12xbf16>
    %c2 = arith.constant 2 : index
    %c0_10 = arith.constant 0 : index
    %c0_11 = arith.constant 0 : index
    %17 = vector.load %arg2[%c2, %c0_10, %c0_11] : memref<4x12x128xbf16, #tpu.memory_space<vmem>>, vector<1x12x128xbf16>
    %18 = vector.shape_cast %17 : vector<1x12x128xbf16> to vector<12x128xbf16>
    %cst_12 = arith.constant dense<0.000000e+00> : vector<128x128xf32>
    %19 = tpu.matmul %16, %18, %cst_12 {dimension_numbers = #tpu.dot_dimension_numbers<[1], [0], [0], [1], [0, 0, 1, 1], [], []>} : vector<128x12xbf16>, vector<12x128xbf16>, vector<128x128xf32> -> vector<128x128xf32>
    %20 = arith.addf %14, %19 : vector<128x128xf32>
    %21 = vector.extract_strided_slice %1 {offsets = [1, 1, 0], sizes = [8, 16, 12], strides = [1, 1, 1]} : vector<9x17x12xbf16> to vector<8x16x12xbf16>
    %22 = vector.shape_cast %21 : vector<8x16x12xbf16> to vector<128x12xbf16>
    %c3 = arith.constant 3 : index
    %c0_13 = arith.constant 0 : index
    %c0_14 = arith.constant 0 : index
    %23 = vector.load %arg2[%c3, %c0_13, %c0_14] : memref<4x12x128xbf16, #tpu.memory_space<vmem>>, vector<1x12x128xbf16>
    %24 = vector.shape_cast %23 : vector<1x12x128xbf16> to vector<12x128xbf16>
    %cst_15 = arith.constant dense<0.000000e+00> : vector<128x128xf32>
    %25 = tpu.matmul %22, %24, %cst_15 {dimension_numbers = #tpu.dot_dimension_numbers<[1], [0], [0], [1], [0, 0, 1, 1], [], []>} : vector<128x12xbf16>, vector<12x128xbf16>, vector<128x128xf32> -> vector<128x128xf32>
    %26 = arith.addf %20, %25 : vector<128x128xf32>
    %c0_16 = arith.constant 0 : index
    %c0_17 = arith.constant 0 : index
    %27 = vector.load %arg3[%c0_16, %c0_17] : memref<1x128xf32, #tpu.memory_space<vmem>>, vector<1x128xf32>
    %28 = vector.broadcast %27 : vector<1x128xf32> to vector<128x128xf32>
    %29 = arith.addf %26, %28 : vector<128x128xf32>
    %cst_18 = arith.constant 0.000000e+00 : f32
    %30 = vector.broadcast %cst_18 : f32 to vector<128x128xf32>
    %31 = arith.maximumf %29, %30 : vector<128x128xf32>
    %c0_19 = arith.constant 0 : index
    %c0_20 = arith.constant 0 : index
    %c0_21 = arith.constant 0 : index
    %32 = vector.load %arg4[%c0_19, %c0_20, %c0_21] : memref<1x128x128xf32, #tpu.memory_space<vmem>>, vector<1x128x128xf32>
    %33 = vector.shape_cast %32 : vector<1x128x128xf32> to vector<128x128xf32>
    %34 = vector.shape_cast %31 : vector<128x128xf32> to vector<1x128x128xf32>
    tpu.vector_store %arg4[%c0_19, %c0_20, %c0_21], %34 {strides = array<i32>} : memref<1x128x128xf32, #tpu.memory_space<vmem>>, vector<1x128x128xf32>,
    return
  }
  func.func @transform_0(%arg0: i32) -> (i32, i32, i32, i32) {
    %c0_i32 = arith.constant 0 : i32
    %c0_i32_0 = arith.constant 0 : i32
    %c0_i32_1 = arith.constant 0 : i32
    %c0_i32_2 = arith.constant 0 : i32
    return %arg0, %c0_i32, %c0_i32_0, %c0_i32_1 : i32, i32, i32, i32
  }
  func.func @transform_1(%arg0: i32) -> (i32, i32, i32) {
    %c0_i32 = arith.constant 0 : i32
    %c0_i32_0 = arith.constant 0 : i32
    %c0_i32_1 = arith.constant 0 : i32
    %c0_i32_2 = arith.constant 0 : i32
    return %c0_i32, %c0_i32_0, %c0_i32_1 : i32, i32, i32
  }
  func.func @transform_2(%arg0: i32) -> (i32, i32) {
    %c0_i32 = arith.constant 0 : i32
    %c0_i32_0 = arith.constant 0 : i32
    %c0_i32_1 = arith.constant 0 : i32
    return %c0_i32, %c0_i32_0 : i32, i32
  }
  func.func @transform_3(%arg0: i32) -> (i32, i32, i32) {
    %c0_i32 = arith.constant 0 : i32
    %c0_i32_0 = arith.constant 0 : i32
    %c0_i32_1 = arith.constant 0 : i32
    return %arg0, %c0_i32, %c0_i32_0 : i32, i32, i32
  }
}

module attributes {stable_mosaic.version = 11 : i64} {
  func.func @_conv_tap_kernel(%arg0: i32, %arg1: memref<1x9x9x32xbf16, #tpu.memory_space<vmem>>, %arg2: memref<4x32x128xbf16, #tpu.memory_space<vmem>>, %arg3: memref<1x128xf32, #tpu.memory_space<vmem>>, %arg4: memref<1x64x128xf32, #tpu.memory_space<vmem>>) attributes {dimension_semantics = [#tpu.dimension_semantics<parallel>], iteration_bounds = array<i64: 2>, scalar_prefetch = 0 : i64, scratch_operands = 0 : i64, tpu.core_type = #tpu.core_type<tc>, window_params = [{transform_indices = @transform_0, window_bounds = array<i64: 1, 9, 9, 32>}, {pipeline_mode = #tpu.pipeline_mode<synchronous>, transform_indices = @transform_1, window_bounds = array<i64: 4, 32, 128>}, {pipeline_mode = #tpu.pipeline_mode<synchronous>, transform_indices = @transform_2, window_bounds = array<i64: 1, 128>}, {transform_indices = @transform_3, window_bounds = array<i64: 1, 64, 128>}]} {
    %c0 = arith.constant 0 : index
    %c0_0 = arith.constant 0 : index
    %c0_1 = arith.constant 0 : index
    %c0_2 = arith.constant 0 : index
    %0 = vector.load %arg1[%c0, %c0_0, %c0_1, %c0_2] : memref<1x9x9x32xbf16, #tpu.memory_space<vmem>>, vector<1x9x9x32xbf16>
    %1 = vector.shape_cast %0 : vector<1x9x9x32xbf16> to vector<9x9x32xbf16>
    %cst = arith.constant 0.000000e+00 : f32
    %2 = vector.broadcast %cst : f32 to vector<64x128xf32>
    %3 = vector.extract_strided_slice %1 {offsets = [0, 0, 0], sizes = [8, 8, 32], strides = [1, 1, 1]} : vector<9x9x32xbf16> to vector<8x8x32xbf16>
    %4 = vector.shape_cast %3 : vector<8x8x32xbf16> to vector<64x32xbf16>
    %c0_3 = arith.constant 0 : index
    %c0_4 = arith.constant 0 : index
    %c0_5 = arith.constant 0 : index
    %5 = vector.load %arg2[%c0_3, %c0_4, %c0_5] : memref<4x32x128xbf16, #tpu.memory_space<vmem>>, vector<1x32x128xbf16>
    %6 = vector.shape_cast %5 : vector<1x32x128xbf16> to vector<32x128xbf16>
    %cst_6 = arith.constant dense<0.000000e+00> : vector<64x128xf32>
    %7 = tpu.matmul %4, %6, %cst_6 {dimension_numbers = #tpu.dot_dimension_numbers<[1], [0], [0], [1], [0, 0, 1, 1], [], []>} : vector<64x32xbf16>, vector<32x128xbf16>, vector<64x128xf32> -> vector<64x128xf32>
    %8 = arith.addf %2, %7 : vector<64x128xf32>
    %9 = vector.extract_strided_slice %1 {offsets = [0, 1, 0], sizes = [8, 8, 32], strides = [1, 1, 1]} : vector<9x9x32xbf16> to vector<8x8x32xbf16>
    %10 = vector.shape_cast %9 : vector<8x8x32xbf16> to vector<64x32xbf16>
    %c1 = arith.constant 1 : index
    %c0_7 = arith.constant 0 : index
    %c0_8 = arith.constant 0 : index
    %11 = vector.load %arg2[%c1, %c0_7, %c0_8] : memref<4x32x128xbf16, #tpu.memory_space<vmem>>, vector<1x32x128xbf16>
    %12 = vector.shape_cast %11 : vector<1x32x128xbf16> to vector<32x128xbf16>
    %cst_9 = arith.constant dense<0.000000e+00> : vector<64x128xf32>
    %13 = tpu.matmul %10, %12, %cst_9 {dimension_numbers = #tpu.dot_dimension_numbers<[1], [0], [0], [1], [0, 0, 1, 1], [], []>} : vector<64x32xbf16>, vector<32x128xbf16>, vector<64x128xf32> -> vector<64x128xf32>
    %14 = arith.addf %8, %13 : vector<64x128xf32>
    %15 = vector.extract_strided_slice %1 {offsets = [1, 0, 0], sizes = [8, 8, 32], strides = [1, 1, 1]} : vector<9x9x32xbf16> to vector<8x8x32xbf16>
    %16 = vector.shape_cast %15 : vector<8x8x32xbf16> to vector<64x32xbf16>
    %c2 = arith.constant 2 : index
    %c0_10 = arith.constant 0 : index
    %c0_11 = arith.constant 0 : index
    %17 = vector.load %arg2[%c2, %c0_10, %c0_11] : memref<4x32x128xbf16, #tpu.memory_space<vmem>>, vector<1x32x128xbf16>
    %18 = vector.shape_cast %17 : vector<1x32x128xbf16> to vector<32x128xbf16>
    %cst_12 = arith.constant dense<0.000000e+00> : vector<64x128xf32>
    %19 = tpu.matmul %16, %18, %cst_12 {dimension_numbers = #tpu.dot_dimension_numbers<[1], [0], [0], [1], [0, 0, 1, 1], [], []>} : vector<64x32xbf16>, vector<32x128xbf16>, vector<64x128xf32> -> vector<64x128xf32>
    %20 = arith.addf %14, %19 : vector<64x128xf32>
    %21 = vector.extract_strided_slice %1 {offsets = [1, 1, 0], sizes = [8, 8, 32], strides = [1, 1, 1]} : vector<9x9x32xbf16> to vector<8x8x32xbf16>
    %22 = vector.shape_cast %21 : vector<8x8x32xbf16> to vector<64x32xbf16>
    %c3 = arith.constant 3 : index
    %c0_13 = arith.constant 0 : index
    %c0_14 = arith.constant 0 : index
    %23 = vector.load %arg2[%c3, %c0_13, %c0_14] : memref<4x32x128xbf16, #tpu.memory_space<vmem>>, vector<1x32x128xbf16>
    %24 = vector.shape_cast %23 : vector<1x32x128xbf16> to vector<32x128xbf16>
    %cst_15 = arith.constant dense<0.000000e+00> : vector<64x128xf32>
    %25 = tpu.matmul %22, %24, %cst_15 {dimension_numbers = #tpu.dot_dimension_numbers<[1], [0], [0], [1], [0, 0, 1, 1], [], []>} : vector<64x32xbf16>, vector<32x128xbf16>, vector<64x128xf32> -> vector<64x128xf32>
    %26 = arith.addf %20, %25 : vector<64x128xf32>
    %c0_16 = arith.constant 0 : index
    %c0_17 = arith.constant 0 : index
    %27 = vector.load %arg3[%c0_16, %c0_17] : memref<1x128xf32, #tpu.memory_space<vmem>>, vector<1x128xf32>
    %28 = vector.broadcast %27 : vector<1x128xf32> to vector<64x128xf32>
    %29 = arith.addf %26, %28 : vector<64x128xf32>
    %cst_18 = arith.constant 0.000000e+00 : f32
    %30 = vector.broadcast %cst_18 : f32 to vector<64x128xf32>
    %31 = arith.maximumf %29, %30 : vector<64x128xf32>
    %c0_19 = arith.constant 0 : index
    %c0_20 = arith.constant 0 : index
    %c0_21 = arith.constant 0 : index
    %32 = vector.load %arg4[%c0_19, %c0_20, %c0_21] : memref<1x64x128xf32, #tpu.memory_space<vmem>>, vector<1x64x128xf32>
    %33 = vector.shape_cast %32 : vector<1x64x128xf32> to vector<64x128xf32>
    %34 = vector.shape_cast %31 : vector<64x128xf32> to vector<1x64x128xf32>
    tpu.vector_store %arg4[%c0_19, %c0_20, %c0_21], %34 {strides = array<i32>} : memref<1x64x128xf32, #tpu.memory_space<vmem>>, vector<1x64x128xf32>,
    return
  }
  func.func @transform_0(%arg0: i32) -> (i32, i32, i32, i32) {
    %c0_i32 = arith.constant 0 : i32
    %c0_i32_0 = arith.constant 0 : i32
    %c0_i32_1 = arith.constant 0 : i32
    %c0_i32_2 = arith.constant 0 : i32
    return %arg0, %c0_i32, %c0_i32_0, %c0_i32_1 : i32, i32, i32, i32
  }
  func.func @transform_1(%arg0: i32) -> (i32, i32, i32) {
    %c0_i32 = arith.constant 0 : i32
    %c0_i32_0 = arith.constant 0 : i32
    %c0_i32_1 = arith.constant 0 : i32
    %c0_i32_2 = arith.constant 0 : i32
    return %c0_i32, %c0_i32_0, %c0_i32_1 : i32, i32, i32
  }
  func.func @transform_2(%arg0: i32) -> (i32, i32) {
    %c0_i32 = arith.constant 0 : i32
    %c0_i32_0 = arith.constant 0 : i32
    %c0_i32_1 = arith.constant 0 : i32
    return %c0_i32, %c0_i32_0 : i32, i32
  }
  func.func @transform_3(%arg0: i32) -> (i32, i32, i32) {
    %c0_i32 = arith.constant 0 : i32
    %c0_i32_0 = arith.constant 0 : i32
    %c0_i32_1 = arith.constant 0 : i32
    return %arg0, %c0_i32, %c0_i32_0 : i32, i32, i32
  }
}

module attributes {stable_mosaic.version = 11 : i64} {
  func.func @_conv_tap_kernel(%arg0: i32, %arg1: memref<1x5x5x64xbf16, #tpu.memory_space<vmem>>, %arg2: memref<4x64x128xbf16, #tpu.memory_space<vmem>>, %arg3: memref<1x128xf32, #tpu.memory_space<vmem>>, %arg4: memref<1x16x128xf32, #tpu.memory_space<vmem>>) attributes {dimension_semantics = [#tpu.dimension_semantics<parallel>], iteration_bounds = array<i64: 2>, scalar_prefetch = 0 : i64, scratch_operands = 0 : i64, tpu.core_type = #tpu.core_type<tc>, window_params = [{transform_indices = @transform_0, window_bounds = array<i64: 1, 5, 5, 64>}, {pipeline_mode = #tpu.pipeline_mode<synchronous>, transform_indices = @transform_1, window_bounds = array<i64: 4, 64, 128>}, {pipeline_mode = #tpu.pipeline_mode<synchronous>, transform_indices = @transform_2, window_bounds = array<i64: 1, 128>}, {transform_indices = @transform_3, window_bounds = array<i64: 1, 16, 128>}]} {
    %c0 = arith.constant 0 : index
    %c0_0 = arith.constant 0 : index
    %c0_1 = arith.constant 0 : index
    %c0_2 = arith.constant 0 : index
    %0 = vector.load %arg1[%c0, %c0_0, %c0_1, %c0_2] : memref<1x5x5x64xbf16, #tpu.memory_space<vmem>>, vector<1x5x5x64xbf16>
    %1 = vector.shape_cast %0 : vector<1x5x5x64xbf16> to vector<5x5x64xbf16>
    %cst = arith.constant 0.000000e+00 : f32
    %2 = vector.broadcast %cst : f32 to vector<16x128xf32>
    %3 = vector.extract_strided_slice %1 {offsets = [0, 0, 0], sizes = [4, 4, 64], strides = [1, 1, 1]} : vector<5x5x64xbf16> to vector<4x4x64xbf16>
    %4 = vector.shape_cast %3 : vector<4x4x64xbf16> to vector<16x64xbf16>
    %c0_3 = arith.constant 0 : index
    %c0_4 = arith.constant 0 : index
    %c0_5 = arith.constant 0 : index
    %5 = vector.load %arg2[%c0_3, %c0_4, %c0_5] : memref<4x64x128xbf16, #tpu.memory_space<vmem>>, vector<1x64x128xbf16>
    %6 = vector.shape_cast %5 : vector<1x64x128xbf16> to vector<64x128xbf16>
    %cst_6 = arith.constant dense<0.000000e+00> : vector<16x128xf32>
    %7 = tpu.matmul %4, %6, %cst_6 {dimension_numbers = #tpu.dot_dimension_numbers<[1], [0], [0], [1], [0, 0, 1, 1], [], []>} : vector<16x64xbf16>, vector<64x128xbf16>, vector<16x128xf32> -> vector<16x128xf32>
    %8 = arith.addf %2, %7 : vector<16x128xf32>
    %9 = vector.extract_strided_slice %1 {offsets = [0, 1, 0], sizes = [4, 4, 64], strides = [1, 1, 1]} : vector<5x5x64xbf16> to vector<4x4x64xbf16>
    %10 = vector.shape_cast %9 : vector<4x4x64xbf16> to vector<16x64xbf16>
    %c1 = arith.constant 1 : index
    %c0_7 = arith.constant 0 : index
    %c0_8 = arith.constant 0 : index
    %11 = vector.load %arg2[%c1, %c0_7, %c0_8] : memref<4x64x128xbf16, #tpu.memory_space<vmem>>, vector<1x64x128xbf16>
    %12 = vector.shape_cast %11 : vector<1x64x128xbf16> to vector<64x128xbf16>
    %cst_9 = arith.constant dense<0.000000e+00> : vector<16x128xf32>
    %13 = tpu.matmul %10, %12, %cst_9 {dimension_numbers = #tpu.dot_dimension_numbers<[1], [0], [0], [1], [0, 0, 1, 1], [], []>} : vector<16x64xbf16>, vector<64x128xbf16>, vector<16x128xf32> -> vector<16x128xf32>
    %14 = arith.addf %8, %13 : vector<16x128xf32>
    %15 = vector.extract_strided_slice %1 {offsets = [1, 0, 0], sizes = [4, 4, 64], strides = [1, 1, 1]} : vector<5x5x64xbf16> to vector<4x4x64xbf16>
    %16 = vector.shape_cast %15 : vector<4x4x64xbf16> to vector<16x64xbf16>
    %c2 = arith.constant 2 : index
    %c0_10 = arith.constant 0 : index
    %c0_11 = arith.constant 0 : index
    %17 = vector.load %arg2[%c2, %c0_10, %c0_11] : memref<4x64x128xbf16, #tpu.memory_space<vmem>>, vector<1x64x128xbf16>
    %18 = vector.shape_cast %17 : vector<1x64x128xbf16> to vector<64x128xbf16>
    %cst_12 = arith.constant dense<0.000000e+00> : vector<16x128xf32>
    %19 = tpu.matmul %16, %18, %cst_12 {dimension_numbers = #tpu.dot_dimension_numbers<[1], [0], [0], [1], [0, 0, 1, 1], [], []>} : vector<16x64xbf16>, vector<64x128xbf16>, vector<16x128xf32> -> vector<16x128xf32>
    %20 = arith.addf %14, %19 : vector<16x128xf32>
    %21 = vector.extract_strided_slice %1 {offsets = [1, 1, 0], sizes = [4, 4, 64], strides = [1, 1, 1]} : vector<5x5x64xbf16> to vector<4x4x64xbf16>
    %22 = vector.shape_cast %21 : vector<4x4x64xbf16> to vector<16x64xbf16>
    %c3 = arith.constant 3 : index
    %c0_13 = arith.constant 0 : index
    %c0_14 = arith.constant 0 : index
    %23 = vector.load %arg2[%c3, %c0_13, %c0_14] : memref<4x64x128xbf16, #tpu.memory_space<vmem>>, vector<1x64x128xbf16>
    %24 = vector.shape_cast %23 : vector<1x64x128xbf16> to vector<64x128xbf16>
    %cst_15 = arith.constant dense<0.000000e+00> : vector<16x128xf32>
    %25 = tpu.matmul %22, %24, %cst_15 {dimension_numbers = #tpu.dot_dimension_numbers<[1], [0], [0], [1], [0, 0, 1, 1], [], []>} : vector<16x64xbf16>, vector<64x128xbf16>, vector<16x128xf32> -> vector<16x128xf32>
    %26 = arith.addf %20, %25 : vector<16x128xf32>
    %c0_16 = arith.constant 0 : index
    %c0_17 = arith.constant 0 : index
    %27 = vector.load %arg3[%c0_16, %c0_17] : memref<1x128xf32, #tpu.memory_space<vmem>>, vector<1x128xf32>
    %28 = vector.broadcast %27 : vector<1x128xf32> to vector<16x128xf32>
    %29 = arith.addf %26, %28 : vector<16x128xf32>
    %cst_18 = arith.constant 0.000000e+00 : f32
    %30 = vector.broadcast %cst_18 : f32 to vector<16x128xf32>
    %31 = arith.maximumf %29, %30 : vector<16x128xf32>
    %c0_19 = arith.constant 0 : index
    %c0_20 = arith.constant 0 : index
    %c0_21 = arith.constant 0 : index
    %32 = vector.load %arg4[%c0_19, %c0_20, %c0_21] : memref<1x16x128xf32, #tpu.memory_space<vmem>>, vector<1x16x128xf32>
    %33 = vector.shape_cast %32 : vector<1x16x128xf32> to vector<16x128xf32>
    %34 = vector.shape_cast %31 : vector<16x128xf32> to vector<1x16x128xf32>
    tpu.vector_store %arg4[%c0_19, %c0_20, %c0_21], %34 {strides = array<i32>} : memref<1x16x128xf32, #tpu.memory_space<vmem>>, vector<1x16x128xf32>,
    return
  }
  func.func @transform_0(%arg0: i32) -> (i32, i32, i32, i32) {
    %c0_i32 = arith.constant 0 : i32
    %c0_i32_0 = arith.constant 0 : i32
    %c0_i32_1 = arith.constant 0 : i32
    %c0_i32_2 = arith.constant 0 : i32
    return %arg0, %c0_i32, %c0_i32_0, %c0_i32_1 : i32, i32, i32, i32
  }
  func.func @transform_1(%arg0: i32) -> (i32, i32, i32) {
    %c0_i32 = arith.constant 0 : i32
    %c0_i32_0 = arith.constant 0 : i32
    %c0_i32_1 = arith.constant 0 : i32
    %c0_i32_2 = arith.constant 0 : i32
    return %c0_i32, %c0_i32_0, %c0_i32_1 : i32, i32, i32
  }
  func.func @transform_2(%arg0: i32) -> (i32, i32) {
    %c0_i32 = arith.constant 0 : i32
    %c0_i32_0 = arith.constant 0 : i32
    %c0_i32_1 = arith.constant 0 : i32
    return %c0_i32, %c0_i32_0 : i32, i32
  }
  func.func @transform_3(%arg0: i32) -> (i32, i32, i32) {
    %c0_i32 = arith.constant 0 : i32
    %c0_i32_0 = arith.constant 0 : i32
    %c0_i32_1 = arith.constant 0 : i32
    return %arg0, %c0_i32, %c0_i32_0 : i32, i32, i32
  }
}

module attributes {stable_mosaic.version = 11 : i64} {
  func.func @_conv_tap_kernel(%arg0: i32, %arg1: memref<1x3x3x128xbf16, #tpu.memory_space<vmem>>, %arg2: memref<4x128x128xbf16, #tpu.memory_space<vmem>>, %arg3: memref<1x128xf32, #tpu.memory_space<vmem>>, %arg4: memref<1x4x128xf32, #tpu.memory_space<vmem>>) attributes {dimension_semantics = [#tpu.dimension_semantics<parallel>], iteration_bounds = array<i64: 2>, scalar_prefetch = 0 : i64, scratch_operands = 0 : i64, tpu.core_type = #tpu.core_type<tc>, window_params = [{transform_indices = @transform_0, window_bounds = array<i64: 1, 3, 3, 128>}, {pipeline_mode = #tpu.pipeline_mode<synchronous>, transform_indices = @transform_1, window_bounds = array<i64: 4, 128, 128>}, {pipeline_mode = #tpu.pipeline_mode<synchronous>, transform_indices = @transform_2, window_bounds = array<i64: 1, 128>}, {transform_indices = @transform_3, window_bounds = array<i64: 1, 4, 128>}]} {
    %c0 = arith.constant 0 : index
    %c0_0 = arith.constant 0 : index
    %c0_1 = arith.constant 0 : index
    %c0_2 = arith.constant 0 : index
    %0 = vector.load %arg1[%c0, %c0_0, %c0_1, %c0_2] : memref<1x3x3x128xbf16, #tpu.memory_space<vmem>>, vector<1x3x3x128xbf16>
    %1 = vector.shape_cast %0 : vector<1x3x3x128xbf16> to vector<3x3x128xbf16>
    %cst = arith.constant 0.000000e+00 : f32
    %2 = vector.broadcast %cst : f32 to vector<4x128xf32>
    %3 = vector.extract_strided_slice %1 {offsets = [0, 0, 0], sizes = [2, 2, 128], strides = [1, 1, 1]} : vector<3x3x128xbf16> to vector<2x2x128xbf16>
    %4 = vector.shape_cast %3 : vector<2x2x128xbf16> to vector<4x128xbf16>
    %c0_3 = arith.constant 0 : index
    %c0_4 = arith.constant 0 : index
    %c0_5 = arith.constant 0 : index
    %5 = vector.load %arg2[%c0_3, %c0_4, %c0_5] : memref<4x128x128xbf16, #tpu.memory_space<vmem>>, vector<1x128x128xbf16>
    %6 = vector.shape_cast %5 : vector<1x128x128xbf16> to vector<128x128xbf16>
    %cst_6 = arith.constant dense<0.000000e+00> : vector<4x128xf32>
    %7 = tpu.matmul %4, %6, %cst_6 {dimension_numbers = #tpu.dot_dimension_numbers<[1], [0], [0], [1], [0, 0, 1, 1], [], []>} : vector<4x128xbf16>, vector<128x128xbf16>, vector<4x128xf32> -> vector<4x128xf32>
    %8 = arith.addf %2, %7 : vector<4x128xf32>
    %9 = vector.extract_strided_slice %1 {offsets = [0, 1, 0], sizes = [2, 2, 128], strides = [1, 1, 1]} : vector<3x3x128xbf16> to vector<2x2x128xbf16>
    %10 = vector.shape_cast %9 : vector<2x2x128xbf16> to vector<4x128xbf16>
    %c1 = arith.constant 1 : index
    %c0_7 = arith.constant 0 : index
    %c0_8 = arith.constant 0 : index
    %11 = vector.load %arg2[%c1, %c0_7, %c0_8] : memref<4x128x128xbf16, #tpu.memory_space<vmem>>, vector<1x128x128xbf16>
    %12 = vector.shape_cast %11 : vector<1x128x128xbf16> to vector<128x128xbf16>
    %cst_9 = arith.constant dense<0.000000e+00> : vector<4x128xf32>
    %13 = tpu.matmul %10, %12, %cst_9 {dimension_numbers = #tpu.dot_dimension_numbers<[1], [0], [0], [1], [0, 0, 1, 1], [], []>} : vector<4x128xbf16>, vector<128x128xbf16>, vector<4x128xf32> -> vector<4x128xf32>
    %14 = arith.addf %8, %13 : vector<4x128xf32>
    %15 = vector.extract_strided_slice %1 {offsets = [1, 0, 0], sizes = [2, 2, 128], strides = [1, 1, 1]} : vector<3x3x128xbf16> to vector<2x2x128xbf16>
    %16 = vector.shape_cast %15 : vector<2x2x128xbf16> to vector<4x128xbf16>
    %c2 = arith.constant 2 : index
    %c0_10 = arith.constant 0 : index
    %c0_11 = arith.constant 0 : index
    %17 = vector.load %arg2[%c2, %c0_10, %c0_11] : memref<4x128x128xbf16, #tpu.memory_space<vmem>>, vector<1x128x128xbf16>
    %18 = vector.shape_cast %17 : vector<1x128x128xbf16> to vector<128x128xbf16>
    %cst_12 = arith.constant dense<0.000000e+00> : vector<4x128xf32>
    %19 = tpu.matmul %16, %18, %cst_12 {dimension_numbers = #tpu.dot_dimension_numbers<[1], [0], [0], [1], [0, 0, 1, 1], [], []>} : vector<4x128xbf16>, vector<128x128xbf16>, vector<4x128xf32> -> vector<4x128xf32>
    %20 = arith.addf %14, %19 : vector<4x128xf32>
    %21 = vector.extract_strided_slice %1 {offsets = [1, 1, 0], sizes = [2, 2, 128], strides = [1, 1, 1]} : vector<3x3x128xbf16> to vector<2x2x128xbf16>
    %22 = vector.shape_cast %21 : vector<2x2x128xbf16> to vector<4x128xbf16>
    %c3 = arith.constant 3 : index
    %c0_13 = arith.constant 0 : index
    %c0_14 = arith.constant 0 : index
    %23 = vector.load %arg2[%c3, %c0_13, %c0_14] : memref<4x128x128xbf16, #tpu.memory_space<vmem>>, vector<1x128x128xbf16>
    %24 = vector.shape_cast %23 : vector<1x128x128xbf16> to vector<128x128xbf16>
    %cst_15 = arith.constant dense<0.000000e+00> : vector<4x128xf32>
    %25 = tpu.matmul %22, %24, %cst_15 {dimension_numbers = #tpu.dot_dimension_numbers<[1], [0], [0], [1], [0, 0, 1, 1], [], []>} : vector<4x128xbf16>, vector<128x128xbf16>, vector<4x128xf32> -> vector<4x128xf32>
    %26 = arith.addf %20, %25 : vector<4x128xf32>
    %c0_16 = arith.constant 0 : index
    %c0_17 = arith.constant 0 : index
    %27 = vector.load %arg3[%c0_16, %c0_17] : memref<1x128xf32, #tpu.memory_space<vmem>>, vector<1x128xf32>
    %28 = vector.broadcast %27 : vector<1x128xf32> to vector<4x128xf32>
    %29 = arith.addf %26, %28 : vector<4x128xf32>
    %cst_18 = arith.constant 0.000000e+00 : f32
    %30 = vector.broadcast %cst_18 : f32 to vector<4x128xf32>
    %31 = arith.maximumf %29, %30 : vector<4x128xf32>
    %c0_19 = arith.constant 0 : index
    %c0_20 = arith.constant 0 : index
    %c0_21 = arith.constant 0 : index
    %32 = vector.load %arg4[%c0_19, %c0_20, %c0_21] : memref<1x4x128xf32, #tpu.memory_space<vmem>>, vector<1x4x128xf32>
    %33 = vector.shape_cast %32 : vector<1x4x128xf32> to vector<4x128xf32>
    %34 = vector.shape_cast %31 : vector<4x128xf32> to vector<1x4x128xf32>
    tpu.vector_store %arg4[%c0_19, %c0_20, %c0_21], %34 {strides = array<i32>} : memref<1x4x128xf32, #tpu.memory_space<vmem>>, vector<1x4x128xf32>,
    return
  }
  func.func @transform_0(%arg0: i32) -> (i32, i32, i32, i32) {
    %c0_i32 = arith.constant 0 : i32
    %c0_i32_0 = arith.constant 0 : i32
    %c0_i32_1 = arith.constant 0 : i32
    %c0_i32_2 = arith.constant 0 : i32
    return %arg0, %c0_i32, %c0_i32_0, %c0_i32_1 : i32, i32, i32, i32
  }
  func.func @transform_1(%arg0: i32) -> (i32, i32, i32) {
    %c0_i32 = arith.constant 0 : i32
    %c0_i32_0 = arith.constant 0 : i32
    %c0_i32_1 = arith.constant 0 : i32
    %c0_i32_2 = arith.constant 0 : i32
    return %c0_i32, %c0_i32_0, %c0_i32_1 : i32, i32, i32
  }
  func.func @transform_2(%arg0: i32) -> (i32, i32) {
    %c0_i32 = arith.constant 0 : i32
    %c0_i32_0 = arith.constant 0 : i32
    %c0_i32_1 = arith.constant 0 : i32
    return %c0_i32, %c0_i32_0 : i32, i32
  }
  func.func @transform_3(%arg0: i32) -> (i32, i32, i32) {
    %c0_i32 = arith.constant 0 : i32
    %c0_i32_0 = arith.constant 0 : i32
    %c0_i32_1 = arith.constant 0 : i32
    return %arg0, %c0_i32, %c0_i32_0 : i32, i32, i32
  }
}

</mosaic_0001>

<bundles_post_ra>
// kernel: _lambda_.4
= control target key start
LH: loop header
LB: loop body
LE: loop exit
PB: predicated region body
PF: predicated region fallthrough
CT: control target
= control target key end

     0   :  { %s1353_s12 = smov 0   ;;  %s1626_s0 = inlined_call_operand.vmem [shape: bf16[4,9,17,12], index: 0, kind: input, shape index: {}]   ;;  %s1627_s1 = inlined_call_operand.vmem [shape: bf16[4,12,128], index: 1, kind: input, shape index: {}]   ;;  %s1628_s2 = inlined_call_operand.vmem [shape: f32[1,128], index: 2, kind: input, shape index: {}]   ;;  %s1629_s3 = inlined_call_operand.vmem [shape: f32[4,128,128], index: 3, kind: output, shape index: {}]  }
   0x1 LB: > { %s1119_s13 = sadd.s32 4294967295, %s1331_s12   ;;  %p1123_p0 = scmp.ge.s32.totalorder %s1331_s12, 1  ;;  %s1331_s12 = sphi %s1353_s12, %s13_s12  }
   0x2   : > { %p137_p1 = scmp.lt.s32.totalorder %s1331_s12, 5 }
   0x4   : > { %p138_p2 = pnand %p1123_p0, %p137_p1 }
   0x5   : > { %p161_p3 = scmp.lt.s32.totalorder (!%p138_p2), %s1119_s13, 3 }
   0x6   : > { %141 = sbr.rel (%p138_p2) target bundleno = 296 (0x128), region = 32 }
   0xb   : > { %vm453_vm0 = vcmask 1045504   ;;  %v1312_v0 = vld [vmem:[%s1627_s1] sm:$0x3f]   ;;  %v1313_v1 = vld [vmem:[%s1627_s1 + $0x8] sm:$0x3f]   ;;  %s1633_s13 = smov (!%p161_p3, %s1119_s13), 3 }
   0xc   : > { %1300 = vmatprep.subr.msk.bf16.mxu1 %vm453_vm0, %v1312_v0  ;;  %v624_v2 = vsel %vm453_vm0, %v1312_v0, 0  ;;  %1299 = vmatprep.subr.msk.bf16.mxu0 %vm453_vm0, %v1313_v1  ;;  %s1303_s18 = smul.u32 108, %s1633_s13  ;;  %v455_v3 = vsel %vm453_vm0, %v1313_v1, 0  ;;  %v1316_v4 = vld [vmem:[%s1627_s1 + $0x10] sm:$0x3f]   ;;  %vm428_vm1 = vcmask 97280  }
   0xd   : > { %1246 = vmatpush3.bf16.msra.mxu1 %v624_v2  ;;  %1228 = vmatpush3.bf16.msra.mxu0 %v455_v3  ;;  %v1317_v5 = vld [vmem:[%s1627_s1 + $0x18] sm:$0x3f]   ;;  %vm201_vm2 = vsmask.f32 3328  ;;  %vm202_vm3 = vsmask.f32 7440 }
   0xe   : > { %s1383_s25 = scalar_lea.vmem %s1626_s0, %s1303_s18  ;;  %1301 = vmatprep.subr.msk.bf16.mxu0 %vm453_vm0, %v1316_v4  ;;  %v1387_v6 = vsel %vm453_vm0, %v1316_v4, 0  ;;  %1302 = vmatprep.subr.msk.bf16.mxu1 %vm453_vm0, %v1317_v5  ;;  %vm1402_vm4 = vmor %vm201_vm2, %vm202_vm3  ;;  %v894_v38 = vsel %vm453_vm0, %v1317_v5, 0  ;;  %s1190_s28 = sshll.u32 %s1633_s13, 7 }
   0xf   : > { %v172_v7 = vld [vmem:[%s1383_s25] sm:$0xf]  ;;  %v173_v8 = vld [vmem:[%s1383_s25 + $0x4] sm:$0xf]  ;;  %v175_v9 = vld [vmem:[%s1383_s25 + $0xc] sm:$0xf]  ;;  %s1573_s4 = scalar_lea.vmem %s1629_s3, %s1190_s28 }
  0x10   : > { %v205_v10 = vshrl.u32 %v172_v7, 16  ;;  %v208_v11 = vshll.u32 %v172_v7, 16  ;;  %v214_v12 = vshll.u32 %v173_v8, 16  ;;  %v218_v13 = vshrl.u32 %v173_v8, 16  ;;  %v176_v14 = vld [vmem:[%s1383_s25 + $0x10] sm:$0xf] }
  0x11   : > { %v1146_v15 = vcombine.low %v172_v7, %v173_v8  ;;  %v229_v16 = vshrl.u32 %v175_v9, 16  ;;  %v232_v17 = vshll.u32 %v175_v9, 16  ;;  %v238_v18 = vshll.u32 %v176_v14, 16  ;;  %v174_v19 = vld [vmem:[%s1383_s25 + $0x8] sm:$0x1] }
  0x12   : > { %v207_v20 = vrot.slane %v205_v10, 4  ;;  %v210_v21 = vrot.slane %v208_v11, 5  ;;  %v216_v22 = vrot.slane %v214_v12, 5  ;;  %v220_v23 = vrot.slane %v218_v13, 4  ;;  %v177_v24 = vld [vmem:[%s1383_s25 + $0x14] sm:$0x1] }
  0x13   : > { %1247 = vmatprep.mubr.msk.bf16.mxu1 %vm428_vm1, %v1146_v15  ;;  %v231_v25 = vrot.slane %v229_v16, 4  ;;  %v234_v26 = vrot.slane %v232_v17, 5  ;;  %v240_v27 = vrot.slane %v238_v18, 5  ;;  %v242_v28 = vshrl.u32 %v176_v14, 16  ;;  %v178_v29 = vld [vmem:[%s1383_s25 + $0x18] sm:$0xf] }
  0x14   : > { %v1398_v30 = vcombine.low %v175_v9, %v176_v14  ;;  %v211_v31 = vor.u32 %v210_v21, %v207_v20  ;;  %v221_v32 = vor.u32 %v220_v23, %v216_v22  ;;  %v224_v33 = vshll.u32 %v174_v19, 16  ;;  %v179_v39 = vld [vmem:[%s1383_s25 + $0x1c] sm:$0xf]  ;;  %v181_v48 = vld [vmem:[%s1383_s25 + $0x24] sm:$0xf] }
  0x15   : > { %v244_v34 = vrot.slane %v242_v28, 4  ;;  %v235_v36 = vor.u32 %v234_v26, %v231_v25  ;;  %v248_v37 = vshll.u32 %v177_v24, 16  ;;  %v253_v43 = vshrl.u32 %v178_v29, 16  ;;  %v182_v53 = vld [vmem:[%s1383_s25 + $0x28] sm:$0xf] }
  0x16   : > { %1248 = vmatmul.mubr.msk.bf16.vlgmr.msra.gmra.mxu1 %vm428_vm1, %v1398_v30  ;;  %v212_v40 = vrot.slane %v211_v31, 4  ;;  %v222_v41 = vrot.slane %v221_v32, 4  ;;  %v226_v42 = vrot.slane %v224_v33, 5  ;;  %v256_v47 = vshll.u32 %v178_v29, 16  ;;  %v180_v58 = vld [vmem:[%s1383_s25 + $0x20] sm:$0x1] }
  0x17   : > { %v236_v44 = vrot.slane %v235_v36, 4  ;;  %v245_v45 = vor.u32 %v244_v34, %v240_v27  ;;  %v250_v46 = vrot.slane %v248_v37, 5  ;;  %1282 = vmatpush3.bf16.msra.mxu1 %v894_v38  ;;  %v255_v51 = vrot.slane %v253_v43, 4  ;;  %v183_v63 = vld [vmem:[%s1383_s25 + $0x2c] sm:$0x1] }
  0x18   : > { %v217_v49 = vsel %vm1402_vm4, %v212_v40, %v216_v22  ;;  %v227_v50 = vsel %vm1402_vm4, %v222_v41, %v226_v42  ;;  %v262_v52 = vshll.u32 %v179_v39, 16  ;;  %v258_v57 = vrot.slane %v256_v47, 5  ;;  %v184_v4 = vld [vmem:[%s1383_s25 + $0x30] sm:$0xf]  ;;  %v185_v21 = vld [vmem:[%s1383_s25 + $0x34] sm:$0xf] }
  0x19   : > { %v1129_v54 = vcombine.low %v217_v49, %v227_v50  ;;  %v241_v55 = vsel %vm1402_vm4, %v236_v44, %v240_v27  ;;  %v246_v56 = vrot.slane %v245_v45, 4  ;;  %v266_v60 = vshrl.u32 %v179_v39, 16  ;;  %v187_v27 = vld [vmem:[%s1383_s25 + $0x3c] sm:$0xf]  ;;  %v188_v37 = vld [vmem:[%s1383_s25 + $0x40] sm:$0xf] }
  0x1a   : > { %v264_v59 = vrot.slane %v262_v52, 5  ;;  %v1419_v61 = vcombine.low %v178_v29, %v179_v39  ;;  %v277_v62 = vshrl.u32 %v181_v48, 16  ;;  %v280_v1 = vshll.u32 %v181_v48, 16  ;;  %v186_v42 = vld [vmem:[%s1383_s25 + $0x38] sm:$0x1] }
  0x1b   : > { %1229 = vmatprep.mubr.msk.bf16.mxu0 %vm428_vm1, %v1129_v54  ;;  %v251_v0 = vsel %vm1402_vm4, %v246_v56, %v250_v46  ;;  %v286_v2 = vshll.u32 %v182_v53, 16  ;;  %v290_v3 = vshrl.u32 %v182_v53, 16  ;;  %v268_v7 = vrot.slane %v266_v60, 4  ;;  %v189_v43 = vld [vmem:[%s1383_s25 + $0x44] sm:$0x1] }
  0x1c   : > { %v1426_v5 = vcombine.low %v241_v55, %v251_v0  ;;  %1251 = vmatprep.mubr.msk.bf16.mxu1 %vm428_vm1, %v1419_v61  ;;  %v279_v8 = vrot.slane %v277_v62, 4  ;;  %v1430_v9 = vcombine.low %v181_v48, %v182_v53  ;;  %v282_v10 = vrot.slane %v280_v1, 5  ;;  %v190_v48 = vld [vmem:[%s1383_s25 + $0x48] sm:$0xf]  ;;  %v191_v60 = vld [vmem:[%s1383_s25 + $0x4c] sm:$0xf] }
  0x1d   : > { %v288_v11 = vrot.slane %v286_v2, 5  ;;  %v292_v12 = vrot.slane %v290_v3, 4  ;;  %v259_v13 = vor.u32 %v258_v57, %v255_v51  ;;  %v269_v14 = vor.u32 %v268_v7, %v264_v59 }
  0x1e   : > { %1230 = vmatmul.mubr.msk.bf16.vlgmr.msra.gmra.mxu0 %vm428_vm1, %v1426_v5  ;;  %1252 = vmatmul.mubr.msk.bf16.gmra.mxu1 %vm428_vm1, %v1430_v9  ;;  %v272_v15 = vshll.u32 %v180_v58, 16  ;;  %v296_v16 = vshll.u32 %v183_v63, 16  ;;  %v301_v17 = vshrl.u32 %v184_v4, 16  ;;  %v283_v19 = vor.u32 %v282_v10, %v279_v8  ;;  %v193_v10 = vld [vmem:[%s1383_s25 + $0x54] sm:$0xf] }
  0x1f   : > { %1264 = vmatpush3.bf16.msra.mxu0 %v1387_v6  ;;  %v260_v18 = vrot.slane %v259_v13, 4  ;;  %v293_v20 = vor.u32 %v292_v12, %v288_v11  ;;  %v304_v22 = vshll.u32 %v184_v4, 16  ;;  %v270_v23 = vrot.slane %v269_v14, 4 }
  0x20   : > { %v274_v24 = vrot.slane %v272_v15, 5  ;;  %v298_v25 = vrot.slane %v296_v16, 5  ;;  %v303_v26 = vrot.slane %v301_v17, 4  ;;  %v284_v29 = vrot.slane %v283_v19, 4  ;;  %v194_v15 = vld [vmem:[%s1383_s25 + $0x58] sm:$0xf] }
  0x21   : > { %v265_v28 = vsel %vm1402_vm4, %v260_v18, %v264_v59  ;;  %v294_v31 = vrot.slane %v293_v20, 4  ;;  %v306_v32 = vrot.slane %v304_v22, 5  ;;  %v310_v33 = vshll.u32 %v185_v21, 16 }
  0x22   : > { %v275_v6 = vsel %vm1402_vm4, %v270_v23, %v274_v24  ;;  %v314_v34 = vshrl.u32 %v185_v21, 16  ;;  %v1443_v36 = vcombine.low %v184_v4, %v185_v21  ;;  %v289_v39 = vsel %vm1402_vm4, %v284_v29, %v288_v11  ;;  %v192_v24 = vld [vmem:[%s1383_s25 + $0x50] sm:$0x1]  ;;  %v195_v29 = vld [vmem:[%s1383_s25 + $0x5c] sm:$0x1] }
  0x23   : > { %v1446_v38 = vcombine.low %v265_v28, %v275_v6  ;;  %v299_v40 = vsel %vm1402_vm4, %v294_v31, %v298_v25  ;;  %v325_v41 = vshrl.u32 %v187_v27, 16  ;;  %v312_v45 = vrot.slane %v310_v33, 5 }
  0x24   : > { %v1454_v44 = vcombine.low %v289_v39, %v299_v40  ;;  %v316_v46 = vrot.slane %v314_v34, 4  ;;  %1255 = vmatprep.mubr.msk.bf16.mxu1 %vm428_vm1, %v1443_v36  ;;  %v328_v47 = vshll.u32 %v187_v27, 16  ;;  %v334_v50 = vshll.u32 %v188_v37, 16 }
  0x25   : > { %1233 = vmatprep.mubr.msk.bf16.mxu0 %vm428_vm1, %v1446_v38  ;;  %v327_v49 = vrot.slane %v325_v41, 4  ;;  %v338_v51 = vshrl.u32 %v188_v37, 16  ;;  %v1461_v52 = vcombine.low %v187_v27, %v188_v37  ;;  %v307_v54 = vor.u32 %v306_v32, %v303_v26 }
  0x26   : > { %1234 = vmatmul.mubr.msk.bf16.gmra.mxu0 %vm428_vm1, %v1454_v44  ;;  %v330_v53 = vrot.slane %v328_v47, 5  ;;  %v317_v55 = vor.u32 %v316_v46, %v312_v45  ;;  %v320_v56 = vshll.u32 %v186_v42, 16  ;;  %v336_v57 = vrot.slane %v334_v50, 5 }
  0x27   : > { %v340_v58 = vrot.slane %v338_v51, 4  ;;  %1256 = vmatmul.mubr.msk.bf16.gmra.mxu1 %vm428_vm1, %v1461_v52  ;;  %v344_v59 = vshll.u32 %v189_v43, 16  ;;  %v349_v62 = vshrl.u32 %v190_v48, 16  ;;  %v308_v63 = vrot.slane %v307_v54, 4 }
  0x28   : > { %v318_v0 = vrot.slane %v317_v55, 4  ;;  %v322_v1 = vrot.slane %v320_v56, 5  ;;  %v331_v2 = vor.u32 %v330_v53, %v327_v49  ;;  %v352_v8 = vshll.u32 %v190_v48, 16 }
  0x29   : > { %v341_v3 = vor.u32 %v340_v58, %v336_v57  ;;  %v346_v4 = vrot.slane %v344_v59, 5  ;;  %v351_v7 = vrot.slane %v349_v62, 4  ;;  %v313_v11 = vsel %vm1402_vm4, %v308_v63, %v312_v45  ;;  %v196_v59 = vld [vmem:[%s1383_s25 + $0x60] sm:$0xf] }
  0x2a   : > { %v323_v12 = vsel %vm1402_vm4, %v318_v0, %v322_v1  ;;  %v332_v13 = vrot.slane %v331_v2, 4  ;;  %v358_v14 = vshll.u32 %v191_v60, 16  ;;  %v354_v18 = vrot.slane %v352_v8, 5  ;;  %v198_v8 = vld [vmem:[%s1383_s25 + $0x68] sm:$0x1] }
  0x2b   : > { %v1133_v16 = vcombine.low %v313_v11, %v323_v12  ;;  %v342_v17 = vrot.slane %v341_v3, 4  ;;  %v362_v19 = vshrl.u32 %v191_v60, 16  ;;  %v1476_v22 = vcombine.low %v190_v48, %v191_v60 }
  0x2c   : > { %v337_v20 = vsel %vm1402_vm4, %v332_v13, %v336_v57  ;;  %v360_v21 = vrot.slane %v358_v14, 5  ;;  %v373_v23 = vshrl.u32 %v193_v10, 16  ;;  %v376_v27 = vshll.u32 %v193_v10, 16 }
  0x2d   : > { %1237 = vmatprep.mubr.msk.bf16.mxu0 %vm428_vm1, %v1133_v16  ;;  %v347_v25 = vsel %vm1402_vm4, %v342_v17, %v346_v4  ;;  %v364_v26 = vrot.slane %v362_v19, 4  ;;  %v382_v28 = vshll.u32 %v194_v15, 16  ;;  %1259 = vmatprep.mubr.msk.bf16.mxu1 %vm428_vm1, %v1476_v22  ;;  %v386_v6 = vshrl.u32 %v194_v15, 16 }
  0x2e   : > { %v1134_v31 = vcombine.low %v337_v20, %v347_v25  ;;  %v375_v32 = vrot.slane %v373_v23, 4  ;;  %v1153_v33 = vcombine.low %v193_v10, %v194_v15  ;;  %v378_v34 = vrot.slane %v376_v27, 5 }
  0x2f   : > { %v384_v37 = vrot.slane %v382_v28, 5  ;;  %v355_v39 = vor.u32 %v354_v18, %v351_v7  ;;  %v365_v40 = vor.u32 %v364_v26, %v360_v21  ;;  %v388_v41 = vrot.slane %v386_v6, 4 }
  0x30   : > { %1238 = vmatmul.mubr.msk.bf16.gmra.mxu0 %vm428_vm1, %v1134_v31  ;;  %1260 = vmatmul.mubr.msk.bf16.gmra.mxu1 %vm428_vm1, %v1153_v33  ;;  %v368_v42 = vshll.u32 %v192_v24, 16  ;;  %v392_v43 = vshll.u32 %v195_v29, 16  ;;  %v379_v47 = vor.u32 %v378_v34, %v375_v32  ;;  %v856_v62 = vshrl.u32 %v196_v59, 16 }
  0x31   : > { %v356_v45 = vrot.slane %v355_v39, 4  ;;  %v366_v46 = vrot.slane %v365_v40, 4  ;;  %1283 = vmatprep.mubr.msk.bf16.mxu1 %vm428_vm1, %v1426_v5  ;;  %v389_v49 = vor.u32 %v388_v41, %v384_v37  ;;  %v197_v5 = vld [vmem:[%s1383_s25 + $0x64] sm:$0xf]  ;;  %v859_v63 = vshll.u32 %v196_v59, 16 }
  0x32   : > { %v370_v48 = vrot.slane %v368_v42, 5  ;;  %v394_v50 = vrot.slane %v392_v43, 5  ;;  %v380_v53 = vrot.slane %v379_v47, 4  ;;  %v865_v0 = vshll.u32 %v197_v5, 16 }
  0x33   : > { %v361_v51 = vsel %vm1402_vm4, %v356_v45, %v360_v21  ;;  %v390_v55 = vrot.slane %v389_v49, 4  ;;  %v869_v1 = vshrl.u32 %v197_v5, 16  ;;  %v858_v2 = vrot.slane %v856_v62, 4 }
  0x34   : > { %v371_v54 = vsel %vm1402_vm4, %v366_v46, %v370_v48  ;;  %v385_v57 = vsel %vm1402_vm4, %v380_v53, %v384_v37  ;;  %v861_v3 = vrot.slane %v859_v63, 5  ;;  %v867_v4 = vrot.slane %v865_v0, 5 }
  0x35   : > { %v1135_v56 = vcombine.low %v361_v51, %v371_v54  ;;  %v395_v58 = vsel %vm1402_vm4, %v390_v55, %v394_v50  ;;  %v871_v7 = vrot.slane %v869_v1, 4  ;;  %v875_v10 = vshll.u32 %v198_v8, 16 }
  0x36   : > { %v1136_v60 = vcombine.low %v385_v57, %v395_v58 }
  0x37   : > { %1241 = vmatprep.mubr.msk.bf16.mxu0 %vm428_vm1, %v1135_v56  ;;  %v877_v12 = vrot.slane %v875_v10, 5 }
  0x38   : > { %1284 = vmatmul.mubr.msk.bf16.vlgmr.msra.gmra.mxu1 %vm428_vm1, %v1446_v38  ;;  %1242 = vmatmul.mubr.msk.bf16.gmra.mxu0 %vm428_vm1, %v1136_v60  ;;  %v862_v38 = vor.u32 %v861_v3, %v858_v2 }
  0x39   : > { %1287 = vmatprep.mubr.msk.bf16.mxu1 %vm428_vm1, %v1454_v44  ;;  %1265 = vmatprep.mubr.msk.bf16.mxu0 %vm428_vm1, %v1398_v30  ;;  %v872_v44 = vor.u32 %v871_v7, %v867_v4 }
  0x3a   : > { %v863_v11 = vrot.slane %v862_v38, 4 }
  0x3b   : > { %v873_v30 = vrot.slane %v872_v44, 4 }
  0x3d   : > { %v878_v13 = vsel %vm1402_vm4, %v873_v30, %v877_v12 }
  0x40   : > { %1288 = vmatmul.mubr.msk.bf16.gmra.mxu1 %vm428_vm1, %v1133_v16  ;;  %1266 = vmatmul.mubr.msk.bf16.vlgmr.msra.gmra.mxu0 %vm428_vm1, %v1419_v61  ;;  %v868_v61 = vsel %vm1402_vm4, %v863_v11, %v867_v4 }
  0x41   : > { %1291 = vmatprep.mubr.msk.bf16.mxu1 %vm428_vm1, %v1134_v31  ;;  %1269 = vmatprep.mubr.msk.bf16.mxu0 %vm428_vm1, %v1430_v9  ;;  %v1177_v9 = vcombine.low %v868_v61, %v878_v13 }
  0x48   : > { %1292 = vmatmul.mubr.msk.bf16.gmra.mxu1 %vm428_vm1, %v1135_v56  ;;  %1270 = vmatmul.mubr.msk.bf16.gmra.mxu0 %vm428_vm1, %v1443_v36  ;;  %v1165_v36 = vcombine.low %v196_v59, %v197_v5  ;;  %v1566_v59 = vld [vmem:[%s1628_s2] ss:$0 sm:$0xff] }
  0x49   : > { %1295 = vmatprep.mubr.msk.bf16.mxu1 %vm428_vm1, %v1136_v60  ;;  %1273 = vmatprep.mubr.msk.bf16.mxu0 %vm428_vm1, %v1461_v52 }
  0x50   : > { %1296 = vmatmul.mubr.msk.bf16.gmra.mxu1 %vm428_vm1, %v1177_v9  ;;  %1274 = vmatmul.mubr.msk.bf16.gmra.mxu0 %vm428_vm1, %v1476_v22 }
  0x51   : > { %1277 = vmatprep.mubr.msk.bf16.mxu0 %vm428_vm1, %v1153_v33 }
  0x58   : > { %1278 = vmatmul.mubr.msk.bf16.gmra.mxu0 %vm428_vm1, %v1165_v36 }
  0xd6   : > { %v1249_v14 = vpop.f32.mrf.mxu1 }
  0xd8   : > { %v660_v15 = vpop.f32.mrf.mxu1 }
  0xda   : > { %v1250_v16 = vpop.f32.mrf.mxu1 }
  0xdc   : > { %v663_v17 = vpop.f32.mrf.mxu1 }
  0xde   : > { %v1231_v35 = vpop.f32.mrf.mxu0  ;;  %v1253_v18 = vpop.f32.mrf.mxu1 }
  0xdf   : > { %v669_v53 = vadd.f32 %v1249_v14, %v1231_v35 }
  0xe0   : > { %v491_v19 = vpop.f32.mrf.mxu0  ;;  %v676_v20 = vpop.f32.mrf.mxu1 }
  0xe1   : > { %v661_v56 = vadd.f32 %v660_v15, %v491_v19 }
  0xe2   : > { %v1232_v52 = vpop.f32.mrf.mxu0  ;;  %v1254_v21 = vpop.f32.mrf.mxu1 }
  0xe3   : > { %v672_v60 = vadd.f32 %v1250_v16, %v1232_v52 }
  0xe4   : > { %v494_v23 = vpop.f32.mrf.mxu0  ;;  %v1529_v24 = vpop.f32.mrf.mxu1 }
  0xe5   : > { %v664_v2 = vadd.f32 %v663_v17, %v494_v23 }
  0xe6   : > { %v1235_v25 = vpop.f32.mrf.mxu0 }
  0xe7   : > { %v1531_v22 = vpop.f32.mrf.mxu1  ;;  %v685_v38 = vadd.f32 %v1253_v18, %v1235_v25 }
  0xe8   : > { %v507_v26 = vpop.f32.mrf.mxu0 }
  0xe9   : > { %v1533_v27 = vpop.f32.mrf.mxu1  ;;  %v677_v13 = vadd.f32 %v676_v20, %v507_v26 }
  0xea   : > { %v1236_v28 = vpop.f32.mrf.mxu0 }
  0xeb   : > { %v1535_v29 = vpop.f32.mrf.mxu1  ;;  %v688_v35 = vadd.f32 %v1254_v21, %v1236_v28 }
  0xec   : > { %v510_v31 = vpop.f32.mrf.mxu0 }
  0xed   : > { %v1537_v32 = vpop.f32.mrf.mxu1  ;;  %v680_v20 = vadd.f32 %v1529_v24, %v510_v31 }
  0xf0   : > { %v1539_v6 = vpop.f32.mrf.mxu0  ;;  %v1541_v33 = vpop.f32.mrf.mxu1 }
  0xf1   : > { %v701_v21 = vadd.f32 %v1531_v22, %v1539_v6 }
  0xf2   : > { %v1543_v34 = vpop.f32.mrf.mxu0  ;;  %v1545_v37 = vpop.f32.mrf.mxu1 }
  0xf3   : > { %v693_v31 = vadd.f32 %v1533_v27, %v1543_v34 }
  0xf4   : > { %v1547_v39 = vpop.f32.mrf.mxu0  ;;  %v1549_v40 = vpop.f32.mrf.mxu1 }
  0xf5   : > { %v704_v6 = vadd.f32 %v1535_v29, %v1547_v39 }
  0xf6   : > { %v1551_v41 = vpop.f32.mrf.mxu0  ;;  %v1553_v42 = vpop.f32.mrf.mxu1 }
  0xf7   : > { %v696_v34 = vadd.f32 %v1537_v32, %v1551_v41 }
  0xf8   : > { %v1285_v43 = vpop.f32.mrf.mxu1  ;;  %v1555_v45 = vpop.f32.mrf.mxu0 }
  0xf9   : > { %v717_v39 = vadd.f32 %v1541_v33, %v1555_v45 }
  0xfa   : > { %v930_v46 = vpop.f32.mrf.mxu1  ;;  %v1557_v47 = vpop.f32.mrf.mxu0 }
  0xfb   : > { %v709_v41 = vadd.f32 %v1545_v37, %v1557_v47 }
  0xfc   : > { %v1286_v48 = vpop.f32.mrf.mxu1  ;;  %v1559_v49 = vpop.f32.mrf.mxu0 }
  0xfd   : > { %v720_v45 = vadd.f32 %v1549_v40, %v1559_v49 }
  0xfe   : > { %v933_v50 = vpop.f32.mrf.mxu1  ;;  %v1561_v51 = vpop.f32.mrf.mxu0 }
  0xff   : > { %v712_v47 = vadd.f32 %v1553_v42, %v1561_v51 }
 0x100   : > { %v1289_v54 = vpop.f32.mrf.mxu1  ;;  %v1267_v55 = vpop.f32.mrf.mxu0 }
 0x101   : > { %v841_v57 = vadd.f32 %v1267_v55, %v669_v53 }
 0x102   : > { %v946_v58 = vpop.f32.mrf.mxu1  ;;  %v776_v5 = vpop.f32.mrf.mxu0 }
 0x103   : > { %v995_v62 = vadd.f32 %v1285_v43, %v841_v57  ;;  %v839_v63 = vadd.f32 %v776_v5, %v661_v56 }
 0x104   : > { %v1290_v0 = vpop.f32.mrf.mxu1  ;;  %v1268_v1 = vpop.f32.mrf.mxu0 }
 0x105   : > { %v1018_v3 = vadd.f32 %v1566_v59, %v995_v62  ;;  %v993_v4 = vadd.f32 %v930_v46, %v839_v63  ;;  %v842_v7 = vadd.f32 %v1268_v1, %v672_v60 }
 0x106   : > { %v949_v8 = vpop.f32.mrf.mxu1  ;;  %v779_v44 = vpop.f32.mrf.mxu0 }
 0x107   : > { %v1034_v10 = vmax.f32 %v1018_v3, 0.0  ;;  %v1016_v11 = vadd.f32 %v1566_v59, %v993_v4  ;;  %v996_v30 = vadd.f32 %v1286_v48, %v842_v7  ;;  %v840_v12 = vadd.f32 %v779_v44, %v664_v2 }
 0x108   : > { %v1293_v61 = vpop.f32.mrf.mxu1  ;;  %v1271_v9 = vpop.f32.mrf.mxu0 }
 0x109   : > { %1050 = vst [vmem:[%s1573_s4 + $0x10] sm:$0xff] %v1034_v10  ;;  %v1032_v36 = vmax.f32 %v1016_v11, 0.0  ;;  %v1019_v14 = vadd.f32 %v1566_v59, %v996_v30  ;;  %v994_v15 = vadd.f32 %v933_v50, %v840_v12  ;;  %v845_v16 = vadd.f32 %v1271_v9, %v685_v38 }
 0x10a   : > { %v962_v17 = vpop.f32.mrf.mxu1  ;;  %v792_v18 = vpop.f32.mrf.mxu0 }
 0x10b   : > { %1048 = vst [vmem:[%s1573_s4] sm:$0xff] %v1032_v36  ;;  %v1035_v19 = vmax.f32 %v1019_v14, 0.0  ;;  %v1017_v52 = vadd.f32 %v1566_v59, %v994_v15  ;;  %v999_v23 = vadd.f32 %v1289_v54, %v845_v16  ;;  %v843_v25 = vadd.f32 %v792_v18, %v677_v13 }
 0x10c   : > { %v1272_v26 = vpop.f32.mrf.mxu0  ;;  %v1294_v43 = vpop.f32.mrf.mxu1 }
 0x10d   : > { %1051 = vst [vmem:[%s1573_s4 + $0x18] sm:$0xff] %v1035_v19  ;;  %v1033_v46 = vmax.f32 %v1017_v52, 0.0  ;;  %v1022_v48 = vadd.f32 %v1566_v59, %v999_v23  ;;  %v997_v50 = vadd.f32 %v946_v58, %v843_v25  ;;  %v846_v53 = vadd.f32 %v1272_v26, %v688_v35 }
 0x10e   : > { %v795_v28 = vpop.f32.mrf.mxu0  ;;  %v965_v5 = vpop.f32.mrf.mxu1 }
 0x10f   : > { %1049 = vst [vmem:[%s1573_s4 + $0x8] sm:$0xff] %v1033_v46  ;;  %v1038_v55 = vmax.f32 %v1022_v48, 0.0  ;;  %v1020_v54 = vadd.f32 %v1566_v59, %v997_v50  ;;  %v1000_v56 = vadd.f32 %v1290_v0, %v846_v53  ;;  %v844_v24 = vadd.f32 %v795_v28, %v680_v20 }
 0x110   : > { %v1275_v57 = vpop.f32.mrf.mxu0  ;;  %v1297_v4 = vpop.f32.mrf.mxu1 }
 0x111   : > { %1054 = vst [vmem:[%s1573_s4 + $0x30] sm:$0xff] %v1038_v55  ;;  %v1036_v58 = vmax.f32 %v1020_v54, 0.0  ;;  %v1023_v60 = vadd.f32 %v1566_v59, %v1000_v56  ;;  %v998_v62 = vadd.f32 %v949_v8, %v844_v24  ;;  %v849_v22 = vadd.f32 %v1275_v57, %v701_v21 }
 0x112   : > { %v808_v63 = vpop.f32.mrf.mxu0  ;;  %v978_v12 = vpop.f32.mrf.mxu1 }
 0x113   : > { %1052 = vst [vmem:[%s1573_s4 + $0x20] sm:$0xff] %v1036_v58  ;;  %v1039_v0 = vmax.f32 %v1023_v60, 0.0  ;;  %v1021_v1 = vadd.f32 %v1566_v59, %v998_v62  ;;  %v1003_v2 = vadd.f32 %v1293_v61, %v849_v22  ;;  %v847_v27 = vadd.f32 %v808_v63, %v693_v31 }
 0x114   : > { %v1276_v3 = vpop.f32.mrf.mxu0  ;;  %v1298_v35 = vpop.f32.mrf.mxu1 }
 0x115   : > { %1055 = vst [vmem:[%s1573_s4 + $0x38] sm:$0xff] %v1039_v0  ;;  %v1037_v7 = vmax.f32 %v1021_v1, 0.0  ;;  %v1026_v8 = vadd.f32 %v1566_v59, %v1003_v2  ;;  %v1001_v38 = vadd.f32 %v962_v17, %v847_v27  ;;  %v850_v29 = vadd.f32 %v1276_v3, %v704_v6 }
 0x116   : > { %v811_v44 = vpop.f32.mrf.mxu0  ;;  %v981_v46 = vpop.f32.mrf.mxu1 }
 0x117   : > { %1053 = vst [vmem:[%s1573_s4 + $0x28] sm:$0xff] %v1037_v7  ;;  %v1042_v10 = vmax.f32 %v1026_v8, 0.0  ;;  %v1024_v11 = vadd.f32 %v1566_v59, %v1001_v38  ;;  %v1004_v30 = vadd.f32 %v1294_v43, %v850_v29  ;;  %v848_v32 = vadd.f32 %v811_v44, %v696_v34 }
 0x118   : > { %v1279_v61 = vpop.f32.mrf.mxu0 }
 0x119   : > { %1058 = vst [vmem:[%s1573_s4 + $0x50] sm:$0xff] %v1042_v10  ;;  %v1040_v13 = vmax.f32 %v1024_v11, 0.0  ;;  %v1027_v9 = vadd.f32 %v1566_v59, %v1004_v30  ;;  %v1002_v36 = vadd.f32 %v965_v5, %v848_v32  ;;  %v853_v33 = vadd.f32 %v1279_v61, %v717_v39 }
 0x11a   : > { %v824_v14 = vpop.f32.mrf.mxu0 }
 0x11b   : > { %1056 = vst [vmem:[%s1573_s4 + $0x40] sm:$0xff] %v1040_v13  ;;  %v1043_v15 = vmax.f32 %v1027_v9, 0.0  ;;  %v1025_v16 = vadd.f32 %v1566_v59, %v1002_v36  ;;  %v1007_v17 = vadd.f32 %v1297_v4, %v853_v33  ;;  %v851_v37 = vadd.f32 %v824_v14, %v709_v41 }
 0x11c   : > { %v1280_v18 = vpop.f32.mrf.mxu0 }
 0x11d   : > { %1059 = vst [vmem:[%s1573_s4 + $0x58] sm:$0xff] %v1043_v15  ;;  %v1041_v19 = vmax.f32 %v1025_v16, 0.0  ;;  %v1030_v52 = vadd.f32 %v1566_v59, %v1007_v17  ;;  %v1005_v40 = vadd.f32 %v978_v12, %v851_v37  ;;  %v854_v49 = vadd.f32 %v1280_v18, %v720_v45 }
 0x11e   : > { %v827_v23 = vpop.f32.mrf.mxu0 }
 0x11f   : > { %1057 = vst [vmem:[%s1573_s4 + $0x48] sm:$0xff] %v1041_v19  ;;  %v1046_v25 = vmax.f32 %v1030_v52, 0.0  ;;  %v1028_v20 = vadd.f32 %v1566_v59, %v1005_v40  ;;  %v1008_v26 = vadd.f32 %v1298_v35, %v854_v49  ;;  %v852_v43 = vadd.f32 %v827_v23, %v712_v47 }
 0x121   : > { %1062 = vst [vmem:[%s1573_s4 + $0x70] sm:$0xff] %v1046_v25  ;;  %v1044_v42 = vmax.f32 %v1028_v20, 0.0  ;;  %v1031_v51 = vadd.f32 %v1566_v59, %v1008_v26  ;;  %v1006_v48 = vadd.f32 %v981_v46, %v852_v43 }
 0x123   : > { %1060 = vst [vmem:[%s1573_s4 + $0x60] sm:$0xff] %v1044_v42  ;;  %v1047_v50 = vmax.f32 %v1031_v51, 0.0  ;;  %v1029_v53 = vadd.f32 %v1566_v59, %v1006_v48 }
 0x125   : > { %1063 = vst [vmem:[%s1573_s4 + $0x78] sm:$0xff] %v1047_v50  ;;  %v1045_v21 = vmax.f32 %v1029_v53, 0.0 }
 0x127   : > { %1061 = vst [vmem:[%s1573_s4 + $0x68] sm:$0xff] %v1045_v21 }
 0x128 PF: > { %s13_s12 = sadd.s32 1, %s1331_s12  }
 0x129   : > { %p10_p4 = scmp.ge.s32.totalorder %s13_s12, 6  }
 0x12b   :  { %12 = sbr.rel (!%p10_p4) target bundleno = 1 (0x1), region = 65 }

// kernel: _lambda_.5
= control target key start
LH: loop header
LB: loop body
LE: loop exit
PB: predicated region body
PF: predicated region fallthrough
CT: control target
= control target key end

     0   :  { %s1029_s12 = smov 0   ;;  %s1191_s0 = inlined_call_operand.vmem [shape: bf16[2,9,9,32], index: 0, kind: input, shape index: {}]   ;;  %s1192_s1 = inlined_call_operand.vmem [shape: bf16[4,32,128], index: 1, kind: input, shape index: {}]   ;;  %s1193_s2 = inlined_call_operand.vmem [shape: f32[1,128], index: 2, kind: input, shape index: {}]   ;;  %s1194_s3 = inlined_call_operand.vmem [shape: f32[2,64,128], index: 3, kind: output, shape index: {}]  }
   0x1 LB: > { %s840_s13 = sadd.s32 4294967295, %s1007_s12   ;;  %p844_p0 = scmp.ge.s32.totalorder %s1007_s12, 1  ;;  %s1007_s12 = sphi %s1029_s12, %s13_s12  }
   0x2   : > { %p137_p1 = scmp.lt.s32.totalorder %s1007_s12, 3 }
   0x4   : > { %p138_p2 = pnand %p844_p0, %p137_p1 }
   0x5   : > { %p161_p3 = scmp.lt.s32.totalorder (!%p138_p2), %s840_s13, 1 }
   0x6   : > { %141 = sbr.rel (%p138_p2) target bundleno = 266 (0x10a), region = 32 }
   0xb   : > { %v985_v0 = vld [vmem:[%s1192_s1 + $0x8] sm:$0xff]   ;;  %v986_v1 = vld [vmem:[%s1192_s1 + $0x18] sm:$0xff]   ;;  %v987_v2 = vld [vmem:[%s1192_s1] sm:$0xff]   ;;  %s1198_s13 = smov (!%p161_p3, %s840_s13), 1  ;;  %vm338_vm0 = vcmask 261120  }
   0xc   : > { %940 = vmatprep.subr.bf16.mxu1 %v985_v0  ;;  %928 = vmatprep.subr.bf16.mxu0 %v986_v1  ;;  %v988_v3 = vld [vmem:[%s1192_s1 + $0x10] sm:$0xff]   ;;  %s976_s22 = smul.u32 72, %s1198_s13  ;;  %v1055_v4 = vld [vmem:[%s1192_s1 + $0x28] sm:$0xff]   ;;  %v992_v5 = vld [vmem:[%s1192_s1 + $0x38] sm:$0xff]   ;;  %vm194_vm1 = vsmask.f32 3328 }
   0xd   : > { %941 = vmatpush3.bf16.msra.mxu1 %v985_v0  ;;  %929 = vmatpush3.bf16.msra.mxu0 %v986_v1  ;;  %vm195_vm2 = vsmask.f32 7440  ;;  %v996_v36 = vld [vmem:[%s1192_s1 + $0x30] sm:$0xff]   ;;  %s903_s9 = sshll.u32 %s1198_s13, 6 }
   0xe   : > { %942 = vmatprep.subr.bf16.mxu1 %v987_v2  ;;  %930 = vmatprep.subr.bf16.mxu0 %v988_v3  ;;  %s1060_s27 = scalar_lea.vmem %s1191_s0, %s976_s22  ;;  %vm1092_vm3 = vmor %vm194_vm1, %vm195_vm2  ;;  %s1178_s14 = scalar_lea.vmem %s1194_s3, %s903_s9 }
   0xf   : > { %v172_v6 = vld [vmem:[%s1060_s27] sm:$0xf]  ;;  %v1067_v7 = vld [vmem:[%s1060_s27 + $0x8] sm:$0xf]  ;;  %v1070_v8 = vld [vmem:[%s1060_s27 + $0x10] sm:$0xf] }
  0x10   : > { %v198_v9 = vshrl.u32 %v172_v6, 16  ;;  %v201_v10 = vshll.u32 %v172_v6, 16  ;;  %v212_v11 = vshrl.u32 %v1067_v7, 16  ;;  %v215_v12 = vshll.u32 %v1067_v7, 16  ;;  %v1075_v13 = vld [vmem:[%s1060_s27 + $0x18] sm:$0xf] }
  0x11   : > { %943 = vmatpush3.bf16.msra.mxu1 %v987_v2  ;;  %931 = vmatpush3.bf16.msra.mxu0 %v988_v3  ;;  %v862_v14 = vcombine.low %v172_v6, %v1067_v7  ;;  %v863_v15 = vcombine.low %v1070_v8, %v1075_v13  ;;  %v173_v16 = vld [vmem:[%s1060_s27 + $0x4] sm:$0x1]  ;;  %v175_v17 = vld [vmem:[%s1060_s27 + $0xc] sm:$0x1]  ;;  %v177_v18 = vld [vmem:[%s1060_s27 + $0x14] sm:$0x1] }
  0x12   : > { %964 = vmatprep.subr.bf16.mxu1 %v992_v5  ;;  %952 = vmatprep.subr.bf16.mxu0 %v1055_v4  ;;  %v200_v19 = vrot.slane %v198_v9, 4  ;;  %v203_v20 = vrot.slane %v201_v10, 5  ;;  %v207_v21 = vshll.u32 %v173_v16, 16  ;;  %v214_v22 = vrot.slane %v212_v11, 4  ;;  %v179_v25 = vld [vmem:[%s1060_s27 + $0x1c] sm:$0x1] }
  0x13   : > { %944 = vmatprep.mubr.msk.bf16.mxu1 %vm338_vm0, %v862_v14  ;;  %v217_v23 = vrot.slane %v215_v12, 5  ;;  %v221_v24 = vshll.u32 %v175_v17, 16  ;;  %v226_v27 = vshrl.u32 %v1070_v8, 16  ;;  %v229_v28 = vshll.u32 %v1070_v8, 16  ;;  %v1090_v30 = vld [vmem:[%s1060_s27 + $0x20] sm:$0xf] }
  0x14   : > { %945 = vmatmul.mubr.msk.bf16.vlgmr.msra.gmra.mxu1 %vm338_vm0, %v863_v15  ;;  %v204_v26 = vor.u32 %v203_v20, %v200_v19  ;;  %v235_v29 = vshll.u32 %v177_v18, 16  ;;  %v209_v32 = vrot.slane %v207_v21, 5  ;;  %v240_v35 = vshrl.u32 %v1075_v13, 16  ;;  %v181_v37 = vld [vmem:[%s1060_s27 + $0x24] sm:$0x1] }
  0x15   : > { %v218_v33 = vor.u32 %v217_v23, %v214_v22  ;;  %v223_v34 = vrot.slane %v221_v24, 5  ;;  %965 = vmatpush3.bf16.msra.mxu1 %v992_v5  ;;  %v228_v39 = vrot.slane %v226_v27, 4  ;;  %v231_v40 = vrot.slane %v229_v28, 5  ;;  %v1103_v46 = vld [vmem:[%s1060_s27 + $0x28] sm:$0xf] }
  0x16   : > { %v205_v38 = vrot.slane %v204_v26, 4  ;;  %v237_v41 = vrot.slane %v235_v29, 5  ;;  %v242_v43 = vrot.slane %v240_v35, 4  ;;  %v243_v44 = vshll.u32 %v1075_v13, 16  ;;  %966 = vmatprep.subr.bf16.mxu1 %v996_v36  ;;  %v1112_v55 = vld [vmem:[%s1060_s27 + $0x30] sm:$0xf] }
  0x17   : > { %v219_v42 = vrot.slane %v218_v33, 4  ;;  %v249_v45 = vshll.u32 %v179_v25, 16  ;;  %v232_v48 = vor.u32 %v231_v40, %v228_v39  ;;  %v254_v49 = vshrl.u32 %v1090_v30, 16  ;;  %v1115_v60 = vld [vmem:[%s1060_s27 + $0x38] sm:$0xf]  ;;  %v995_v25 = vld [vmem:[%s1192_s1 + $0x20] sm:$0xff]  }
  0x18   : > { %v210_v47 = vsel %vm1092_vm3, %v205_v38, %v209_v32  ;;  %v257_v50 = vshll.u32 %v1090_v30, 16  ;;  %v245_v52 = vrot.slane %v243_v44, 5  ;;  %v263_v54 = vshll.u32 %v181_v37, 16  ;;  %v183_v6 = vld [vmem:[%s1060_s27 + $0x2c] sm:$0x1] }
  0x19   : > { %v224_v51 = vsel %vm1092_vm3, %v219_v42, %v223_v34  ;;  %v251_v53 = vrot.slane %v249_v45, 5  ;;  %967 = vmatpush3.bf16.msra.mxu1 %v996_v36  ;;  %v233_v56 = vrot.slane %v232_v48, 4  ;;  %v256_v57 = vrot.slane %v254_v49, 4  ;;  %v185_v14 = vld [vmem:[%s1060_s27 + $0x34] sm:$0x1] }
  0x1a   : > { %v259_v58 = vrot.slane %v257_v50, 5  ;;  %v852_v59 = vcombine.low %v210_v47, %v224_v51  ;;  %v246_v61 = vor.u32 %v245_v52, %v242_v43  ;;  %v265_v62 = vrot.slane %v263_v54, 5  ;;  %v187_v22 = vld [vmem:[%s1060_s27 + $0x3c] sm:$0x1]  ;;  %v188_v28 = vld [vmem:[%s1060_s27 + $0x40] sm:$0xf] }
  0x1b   : > { %v268_v63 = vshrl.u32 %v1103_v46, 16  ;;  %v271_v0 = vshll.u32 %v1103_v46, 16  ;;  %v238_v1 = vsel %vm1092_vm3, %v233_v56, %v237_v41  ;;  %v864_v3 = vcombine.low %v1090_v30, %v1103_v46  ;;  %v189_v35 = vld [vmem:[%s1060_s27 + $0x44] sm:$0x1] }
  0x1c   : > { %v260_v2 = vor.u32 %v259_v58, %v256_v57  ;;  %932 = vmatprep.mubr.msk.bf16.mxu0 %vm338_vm0, %v852_v59  ;;  %v282_v5 = vshrl.u32 %v1112_v55, 16  ;;  %v247_v9 = vrot.slane %v246_v61, 4  ;;  %v890_v10 = vcombine.low %v224_v51, %v238_v1 }
  0x1d   : > { %v285_v11 = vshll.u32 %v1112_v55, 16  ;;  %v296_v12 = vshrl.u32 %v1115_v60, 16  ;;  %948 = vmatprep.mubr.msk.bf16.mxu1 %vm338_vm0, %v864_v3  ;;  %v299_v16 = vshll.u32 %v1115_v60, 16  ;;  %v865_v17 = vcombine.low %v1112_v55, %v1115_v60 }
  0x1e   : > { %v261_v15 = vrot.slane %v260_v2, 4  ;;  %v270_v18 = vrot.slane %v268_v63, 4  ;;  %v252_v19 = vsel %vm1092_vm3, %v247_v9, %v251_v53  ;;  %v273_v20 = vrot.slane %v271_v0, 5 }
  0x1f   : > { %v277_v21 = vshll.u32 %v183_v6, 16  ;;  %v284_v23 = vrot.slane %v282_v5, 4  ;;  %v853_v24 = vcombine.low %v238_v1, %v252_v19  ;;  %949 = vmatmul.mubr.msk.bf16.gmra.mxu1 %vm338_vm0, %v865_v17  ;;  %v287_v26 = vrot.slane %v285_v11, 5 }
  0x20   : > { %v291_v27 = vshll.u32 %v185_v14, 16  ;;  %v266_v29 = vsel %vm1092_vm3, %v261_v15, %v265_v62  ;;  %v274_v32 = vor.u32 %v273_v20, %v270_v18  ;;  %v298_v34 = vrot.slane %v296_v12, 4  ;;  %968 = vmatprep.mubr.msk.bf16.mxu1 %vm338_vm0, %v890_v10 }
  0x21   : > { %v279_v33 = vrot.slane %v277_v21, 5  ;;  %933 = vmatmul.mubr.msk.bf16.vlgmr.msra.gmra.mxu0 %vm338_vm0, %v853_v24  ;;  %v288_v36 = vor.u32 %v287_v26, %v284_v23  ;;  %v301_v38 = vrot.slane %v299_v16, 5  ;;  %v305_v39 = vshll.u32 %v187_v22, 16  ;;  %v900_v24 = vld [vmem:[%s1193_s2] ss:$0 sm:$0xff] }
  0x22   : > { %v293_v37 = vrot.slane %v291_v27, 5  ;;  %v891_v40 = vcombine.low %v252_v19, %v266_v29  ;;  %953 = vmatpush3.bf16.msra.mxu0 %v1055_v4  ;;  %v275_v41 = vrot.slane %v274_v32, 4  ;;  %v634_v42 = vshrl.u32 %v188_v28, 16 }
  0x23   : > { %v637_v43 = vshll.u32 %v188_v28, 16  ;;  %954 = vmatprep.subr.bf16.mxu0 %v995_v25  ;;  %v289_v44 = vrot.slane %v288_v36, 4  ;;  %v302_v45 = vor.u32 %v301_v38, %v298_v34  ;;  %v307_v47 = vrot.slane %v305_v39, 5 }
  0x24   : > { %v643_v48 = vshll.u32 %v189_v35, 16  ;;  %v280_v49 = vsel %vm1092_vm3, %v275_v41, %v279_v33  ;;  %v636_v50 = vrot.slane %v634_v42, 4  ;;  %v876_v59 = vcombine.low %v1067_v7, %v1070_v8 }
  0x25   : > { %v639_v51 = vrot.slane %v637_v43, 5  ;;  %v854_v52 = vcombine.low %v266_v29, %v280_v49  ;;  %v294_v53 = vsel %vm1092_vm3, %v289_v44, %v293_v37  ;;  %v303_v54 = vrot.slane %v302_v45, 4 }
  0x26   : > { %955 = vmatpush3.bf16.msra.mxu0 %v995_v25  ;;  %v892_v4 = vcombine.low %v280_v49, %v294_v53  ;;  %v645_v57 = vrot.slane %v643_v48, 5  ;;  %v877_v1 = vcombine.low %v1075_v13, %v1090_v30  ;;  %v878_v7 = vcombine.low %v1103_v46, %v1112_v55 }
  0x27   : > { %v640_v56 = vor.u32 %v639_v51, %v636_v50  ;;  %936 = vmatprep.mubr.msk.bf16.mxu0 %vm338_vm0, %v854_v52  ;;  %v308_v58 = vsel %vm1092_vm3, %v303_v54, %v307_v47  ;;  %969 = vmatmul.mubr.msk.bf16.vlgmr.msra.gmra.mxu1 %vm338_vm0, %v891_v40  ;;  %v879_v8 = vcombine.low %v1115_v60, %v188_v28 }
  0x28   : > { %v855_v61 = vcombine.low %v294_v53, %v308_v58  ;;  %972 = vmatprep.mubr.msk.bf16.mxu1 %vm338_vm0, %v892_v4 }
  0x29   : > { %v641_v62 = vrot.slane %v640_v56, 4 }
  0x2a   : > { %937 = vmatmul.mubr.msk.bf16.gmra.mxu0 %vm338_vm0, %v855_v61 }
  0x2b   : > { %v646_v63 = vsel %vm1092_vm3, %v641_v62, %v645_v57  ;;  %956 = vmatprep.mubr.msk.bf16.mxu0 %vm338_vm0, %v876_v59 }
  0x2c   : > { %v893_v0 = vcombine.low %v308_v58, %v646_v63 }
  0x2f   : > { %973 = vmatmul.mubr.msk.bf16.gmra.mxu1 %vm338_vm0, %v893_v0 }
  0x32   : > { %957 = vmatmul.mubr.msk.bf16.vlgmr.msra.gmra.mxu0 %vm338_vm0, %v877_v1 }
  0x33   : > { %960 = vmatprep.mubr.msk.bf16.mxu0 %vm338_vm0, %v878_v7 }
  0x3a   : > { %961 = vmatmul.mubr.msk.bf16.gmra.mxu0 %vm338_vm0, %v879_v8 }
  0xd4   : > { %v946_v31 = vpop.f32.mrf.mxu1 }
  0xd6   : > { %v494_v2 = vpop.f32.mrf.mxu1 }
  0xd8   : > { %v947_v3 = vpop.f32.mrf.mxu1 }
  0xda   : > { %v497_v5 = vpop.f32.mrf.mxu1 }
  0xdf   : > { %v950_v6 = vpop.f32.mrf.mxu1 }
  0xe1   : > { %v934_v9 = vpop.f32.mrf.mxu0  ;;  %v510_v13 = vpop.f32.mrf.mxu1 }
  0xe2   : > { %v503_v19 = vadd.f32 %v946_v31, %v934_v9 }
  0xe3   : > { %v385_v30 = vpop.f32.mrf.mxu0  ;;  %v951_v10 = vpop.f32.mrf.mxu1 }
  0xe4   : > { %v495_v22 = vadd.f32 %v494_v2, %v385_v30 }
  0xe5   : > { %v935_v11 = vpop.f32.mrf.mxu0  ;;  %v513_v12 = vpop.f32.mrf.mxu1 }
  0xe6   : > { %v506_v26 = vadd.f32 %v947_v3, %v935_v11 }
  0xe7   : > { %v388_v46 = vpop.f32.mrf.mxu0  ;;  %v970_v55 = vpop.f32.mrf.mxu1 }
  0xe8   : > { %v498_v33 = vadd.f32 %v497_v5, %v388_v46 }
  0xe9   : > { %v715_v15 = vpop.f32.mrf.mxu1 }
  0xea   : > { %v938_v14 = vpop.f32.mrf.mxu0 }
  0xeb   : > { %v971_v17 = vpop.f32.mrf.mxu1  ;;  %v519_v37 = vadd.f32 %v950_v6, %v938_v14 }
  0xec   : > { %v401_v16 = vpop.f32.mrf.mxu0 }
  0xed   : > { %v718_v21 = vpop.f32.mrf.mxu1  ;;  %v511_v43 = vadd.f32 %v510_v13, %v401_v16 }
  0xee   : > { %v939_v60 = vpop.f32.mrf.mxu0 }
  0xef   : > { %v974_v32 = vpop.f32.mrf.mxu1  ;;  %v522_v51 = vadd.f32 %v951_v10, %v939_v60 }
  0xf0   : > { %v404_v18 = vpop.f32.mrf.mxu0 }
  0xf1   : > { %v731_v44 = vpop.f32.mrf.mxu1  ;;  %v514_v57 = vadd.f32 %v513_v12, %v404_v18 }
  0xf2   : > { %v958_v20 = vpop.f32.mrf.mxu0 }
  0xf3   : > { %v627_v23 = vadd.f32 %v958_v20, %v503_v19  ;;  %v975_v58 = vpop.f32.mrf.mxu1 }
  0xf4   : > { %v594_v25 = vpop.f32.mrf.mxu0 }
  0xf5   : > { %v748_v27 = vadd.f32 %v970_v55, %v627_v23  ;;  %v625_v28 = vadd.f32 %v594_v25, %v495_v22  ;;  %v734_v3 = vpop.f32.mrf.mxu1 }
  0xf6   : > { %v959_v29 = vpop.f32.mrf.mxu0 }
  0xf7   : > { %v763_v34 = vadd.f32 %v900_v24, %v748_v27  ;;  %v746_v35 = vadd.f32 %v715_v15, %v625_v28  ;;  %v628_v36 = vadd.f32 %v959_v29, %v506_v26 }
  0xf8   : > { %v597_v38 = vpop.f32.mrf.mxu0 }
  0xf9   : > { %v771_v39 = vmax.f32 %v763_v34, 0.0  ;;  %v761_v40 = vadd.f32 %v900_v24, %v746_v35  ;;  %v749_v41 = vadd.f32 %v971_v17, %v628_v36  ;;  %v626_v42 = vadd.f32 %v597_v38, %v498_v33 }
  0xfa   : > { %v962_v45 = vpop.f32.mrf.mxu0 }
  0xfb   : > { %779 = vst [vmem:[%s1178_s14 + $0x10] sm:$0xff] %v771_v39  ;;  %v769_v47 = vmax.f32 %v761_v40, 0.0  ;;  %v764_v48 = vadd.f32 %v900_v24, %v749_v41  ;;  %v747_v49 = vadd.f32 %v718_v21, %v626_v42  ;;  %v631_v50 = vadd.f32 %v962_v45, %v519_v37 }
  0xfc   : > { %v610_v52 = vpop.f32.mrf.mxu0 }
  0xfd   : > { %777 = vst [vmem:[%s1178_s14] sm:$0xff] %v769_v47  ;;  %v772_v53 = vmax.f32 %v764_v48, 0.0  ;;  %v762_v54 = vadd.f32 %v900_v24, %v747_v49  ;;  %v752_v4 = vadd.f32 %v974_v32, %v631_v50  ;;  %v629_v56 = vadd.f32 %v610_v52, %v511_v43 }
  0xfe   : > { %v963_v59 = vpop.f32.mrf.mxu0 }
  0xff   : > { %780 = vst [vmem:[%s1178_s14 + $0x18] sm:$0xff] %v772_v53  ;;  %v770_v61 = vmax.f32 %v762_v54, 0.0  ;;  %v767_v62 = vadd.f32 %v900_v24, %v752_v4  ;;  %v750_v63 = vadd.f32 %v731_v44, %v629_v56  ;;  %v632_v0 = vadd.f32 %v963_v59, %v522_v51 }
 0x100   : > { %v613_v1 = vpop.f32.mrf.mxu0 }
 0x101   : > { %778 = vst [vmem:[%s1178_s14 + $0x8] sm:$0xff] %v770_v61  ;;  %v775_v7 = vmax.f32 %v767_v62, 0.0  ;;  %v765_v8 = vadd.f32 %v900_v24, %v750_v63  ;;  %v753_v31 = vadd.f32 %v975_v58, %v632_v0  ;;  %v630_v2 = vadd.f32 %v613_v1, %v514_v57 }
 0x103   : > { %783 = vst [vmem:[%s1178_s14 + $0x30] sm:$0xff] %v775_v7  ;;  %v773_v5 = vmax.f32 %v765_v8, 0.0  ;;  %v768_v6 = vadd.f32 %v900_v24, %v753_v31  ;;  %v751_v9 = vadd.f32 %v734_v3, %v630_v2 }
 0x105   : > { %781 = vst [vmem:[%s1178_s14 + $0x20] sm:$0xff] %v773_v5  ;;  %v776_v13 = vmax.f32 %v768_v6, 0.0  ;;  %v766_v30 = vadd.f32 %v900_v24, %v751_v9 }
 0x107   : > { %784 = vst [vmem:[%s1178_s14 + $0x38] sm:$0xff] %v776_v13  ;;  %v774_v10 = vmax.f32 %v766_v30, 0.0 }
 0x109   : > { %782 = vst [vmem:[%s1178_s14 + $0x28] sm:$0xff] %v774_v10 }
 0x10a PF: > { %s13_s12 = sadd.s32 1, %s1007_s12  }
 0x10b   : > { %p10_p4 = scmp.ge.s32.totalorder %s13_s12, 4  }
 0x10d   :  { %12 = sbr.rel (!%p10_p4) target bundleno = 1 (0x1), region = 65 }

// kernel: _lambda_.6
= control target key start
LH: loop header
LB: loop body
LE: loop exit
PB: predicated region body
PF: predicated region fallthrough
CT: control target
= control target key end

     0   :  { %s934_s12 = smov 0   ;;  %s1092_s0 = inlined_call_operand.vmem [shape: bf16[2,5,5,64], index: 0, kind: input, shape index: {}]   ;;  %s1093_s1 = inlined_call_operand.vmem [shape: bf16[4,64,128], index: 1, kind: input, shape index: {}]   ;;  %s1094_s2 = inlined_call_operand.vmem [shape: f32[1,128], index: 2, kind: input, shape index: {}]   ;;  %s1095_s3 = inlined_call_operand.vmem [shape: f32[2,16,128], index: 3, kind: output, shape index: {}]  }
   0x1 LB: > { %s747_s13 = sadd.s32 4294967295, %s909_s12   ;;  %p751_p0 = scmp.ge.s32.totalorder %s909_s12, 1  ;;  %s909_s12 = sphi %s934_s12, %s13_s12  }
   0x2   : > { %p137_p1 = scmp.lt.s32.totalorder %s909_s12, 3 }
   0x4   : > { %p138_p2 = pnand %p751_p0, %p137_p1 }
   0x5   : > { %p161_p3 = scmp.lt.s32.totalorder (!%p138_p2), %s747_s13, 1 }
   0x6   : > { %141 = sbr.rel (%p138_p2) target bundleno = 264 (0x108), region = 32 }
   0xb   : > { %v883_v0 = vld [vmem:[%s1093_s1 + $0x18] sm:$0xff]   ;;  %v911_v1 = vmov 0.0   ;;  %v885_v3 = vld [vmem:[%s1093_s1 + $0x10] sm:$0xff]   ;;  %vm912_vm0 = vmmov 0   ;;  %s1101_s13 = smov (!%p161_p3, %s747_s13), 1  ;;  %v192_v5 = vlaneseq  ;;  %v887_v6 = vld [vmem:[%s1093_s1 + $0x8] sm:$0xff]  }
   0xc   : > { %835 = vmatprep.subr.bf16.mxu1 %v911_v1  ;;  %823 = vmatprep.subr.bf16.mxu0 %v911_v1  ;;  %v884_v2 = vld [vmem:[%s1093_s1 + $0x38] sm:$0xff]   ;;  %v886_v4 = vld [vmem:[%s1093_s1 + $0x30] sm:$0xff]   ;;  %s871_s24 = smul.u32 20, %s1101_s13  ;;  %v888_v7 = vld [vmem:[%s1093_s1 + $0x28] sm:$0xff]   ;;  %v913_v9 = vmov 1983009808  }
   0xd   : > { %836 = vmatpush3.bf16.msra.mxu1 %v883_v0  ;;  %843 = vmatprep.mubr.msk.bf16.mxu1 %vm912_vm0, %v911_v1  ;;  %v889_v8 = vld [vmem:[%s1093_s1] sm:$0xff]   ;;  %v190_v10 = vunpack.c.l.s4 %v913_v9  ;;  %v193_v11 = vshrl.u32 %v192_v5, 7  ;;  %vm221_vm1 = vsmask.f32 1280  ;;  %vm222_vm2 = vsmask.f32 3336 }
   0xe   : > { %837 = vmatprep.subr.bf16.mxu1 %v911_v1  ;;  %824 = vmatpush3.bf16.msra.mxu0 %v884_v2  ;;  %s165_s29 = scalar_lea.vmem %s1092_s0, %s871_s24  ;;  %v890_v12 = vld [vmem:[%s1093_s1 + $0x20] sm:$0xff]   ;;  %vm334_vm3 = vcmask 523264   ;;  %vm224_vm4 = vsmask.f32 5392  ;;  %v893_v25 = vld [vmem:[%s1093_s1 + $0x78] sm:$0xff]   ;;  %vm223_vm6 = vmor %vm221_vm1, %vm222_vm2  ;;  %s802_s27 = sshll.u32 %s1101_s13, 4 }
   0xf   : > { %825 = vmatprep.subr.bf16.mxu0 %v911_v1  ;;  %831 = vmatprep.mubr.msk.bf16.mxu0 %vm912_vm0, %v911_v1  ;;  %v172_v13 = vld [vmem:[%s165_s29] sm:$0x7]  ;;  %v982_v14 = vld [vmem:[%s165_s29 + $0x4] sm:$0x7]  ;;  %v985_v15 = vld [vmem:[%s165_s29 + $0x8] sm:$0x7]  ;;  %v191_v17 = vunpack.c.0.s8 %v190_v10  ;;  %s170_s30 = scalar_lea.vmem %s1095_s3, %s802_s27 }
  0x10   : > { %v987_v16 = vld [vmem:[%s165_s29 + $0xc] sm:$0x7]  ;;  %v990_v18 = vld [vmem:[%s165_s29 + $0x10] sm:$0x7]  ;;  %v379_v19 = vcombine.low %v172_v13, %v982_v14  ;;  %vm226_vm5 = vsmask.f32 7448  ;;  %vm1016_vm7 = vmor %vm223_vm6, %vm224_vm4  ;;  %v474_v40 = vcombine.low %v982_v14, %v985_v15 }
  0x11   : > { %838 = vmatpush3.bf16.msra.mxu1 %v885_v3  ;;  %v380_v20 = vcombine.low %v985_v15, %v987_v16  ;;  %v995_v21 = vsub.s32 %v191_v17, %v193_v11  ;;  %v895_v51 = vld [vmem:[%s1093_s1 + $0x70] sm:$0xff]   ;;  %vm1030_vm8 = vmor %vm1016_vm7, %vm226_vm5 }
  0x12   : > { %839 = vmatprep.subr.bf16.mxu1 %v911_v1  ;;  %826 = vmatpush3.bf16.msra.mxu0 %v886_v4 }
  0x13   : > { %827 = vmatprep.subr.bf16.mxu0 %v911_v1  ;;  %v195_v22 = vrot.slane %v172_v13, %v995_v21  ;;  %v203_v23 = vrot.slane %v982_v14, %v995_v21  ;;  %v211_v24 = vrot.slane %v985_v15, %v995_v21  ;;  %v219_v26 = vrot.slane %v987_v16, %v995_v21 }
  0x14   : > { %v387_v27 = vrot.slane %v379_v19, %v995_v21  ;;  %v394_v28 = vrot.slane %v380_v20, %v995_v21  ;;  %v567_v29 = vrot.slane %v990_v18, %v995_v21 }
  0x15   : > { %840 = vmatpush3.bf16.msra.mxu1 %v887_v6  ;;  %v229_v30 = vshrl.u32 %v195_v22, 16  ;;  %v232_v31 = vshll.u32 %v195_v22, 16  ;;  %v196_v32 = vcombine.high %v195_v22, %v195_v22  ;;  %v204_v33 = vcombine.high %v203_v23, %v203_v23  ;;  %v897_v6 = vld [vmem:[%s1093_s1 + $0x68] sm:$0xff]  }
  0x16   : > { %841 = vmatprep.subr.bf16.mxu1 %v911_v1  ;;  %828 = vmatpush3.bf16.msra.mxu0 %v888_v7  ;;  %v395_v34 = vcombine.low %v387_v27, %v394_v28  ;;  %v212_v35 = vcombine.high %v211_v24, %v211_v24  ;;  %v220_v36 = vcombine.high %v219_v26, %v219_v26  ;;  %v243_v37 = vshrl.u32 %v203_v23, 16 }
  0x17   : > { %829 = vmatprep.subr.bf16.mxu0 %v911_v1  ;;  %v231_v38 = vrot.slane %v229_v30, 6  ;;  %v234_v39 = vrot.slane %v232_v31, 7  ;;  %v238_v41 = vshll.u32 %v196_v32, 16  ;;  %v246_v42 = vshll.u32 %v203_v23, 16  ;;  %v899_v23 = vld [vmem:[%s1093_s1 + $0x60] sm:$0xff]  }
  0x18   : > { %v245_v43 = vrot.slane %v243_v37, 6  ;;  %v252_v44 = vshll.u32 %v204_v33, 16  ;;  %v257_v45 = vshrl.u32 %v211_v24, 16  ;;  %v260_v46 = vshll.u32 %v211_v24, 16 }
  0x19   : > { %842 = vmatpush3.bf16.msra.mxu1 %v889_v8  ;;  %v235_v47 = vor.u32 %v234_v39, %v231_v38  ;;  %v240_v48 = vrot.slane %v238_v41, 7  ;;  %v248_v49 = vrot.slane %v246_v42, 7  ;;  %v266_v50 = vshll.u32 %v212_v35, 16  ;;  %v896_v38 = vld [vmem:[%s1093_s1 + $0x50] sm:$0xff]   ;;  %v898_v42 = vld [vmem:[%s1093_s1 + $0x48] sm:$0xff]  }
  0x1a   : > { %859 = vmatprep.subr.bf16.mxu1 %v911_v1  ;;  %830 = vmatpush3.bf16.msra.mxu0 %v890_v12  ;;  %v254_v53 = vrot.slane %v252_v44, 7  ;;  %v259_v54 = vrot.slane %v257_v45, 6  ;;  %v262_v55 = vrot.slane %v260_v46, 7  ;;  %v271_v56 = vshrl.u32 %v219_v26, 16  ;;  %v900_v45 = vld [vmem:[%s1093_s1 + $0x40] sm:$0xff]  }
  0x1b   : > { %847 = vmatprep.subr.bf16.mxu0 %v911_v1  ;;  %v236_v57 = vrot.slane %v235_v47, 2  ;;  %v249_v58 = vor.u32 %v248_v49, %v245_v43  ;;  %v268_v59 = vrot.slane %v266_v50, 7  ;;  %v274_v60 = vshll.u32 %v219_v26, 16 }
  0x1c   : > { %844 = vmatmul.mubr.msk.bf16.vlgmr.msra.gmra.mxu1 %vm334_vm3, %v395_v34  ;;  %v263_v61 = vor.u32 %v262_v55, %v259_v54  ;;  %v273_v62 = vrot.slane %v271_v56, 6  ;;  %v280_v63 = vshll.u32 %v220_v36, 16  ;;  %v568_v0 = vcombine.high %v567_v29, %v567_v29  ;;  %v894_v34 = vld [vmem:[%s1093_s1 + $0x58] sm:$0xff]   ;;  %v799_v56 = vld [vmem:[%s1094_s2] ss:$0 sm:$0xff] }
  0x1d   : > { %860 = vmatpush3.bf16.msra.mxu1 %v893_v25  ;;  %867 = vmatprep.mubr.msk.bf16.mxu1 %vm912_vm0, %v911_v1  ;;  %v241_v2 = vsel %vm1030_vm8, %v236_v57, %v240_v48  ;;  %v250_v3 = vrot.slane %v249_v58, 2  ;;  %v276_v4 = vrot.slane %v274_v60, 7  ;;  %v570_v5 = vshrl.u32 %v567_v29, 16 }
  0x1e   : > { %861 = vmatprep.subr.bf16.mxu1 %v911_v1  ;;  %v264_v7 = vrot.slane %v263_v61, 2  ;;  %v573_v8 = vshll.u32 %v567_v29, 16  ;;  %v579_v9 = vshll.u32 %v568_v0, 16  ;;  %v282_v12 = vrot.slane %v280_v63, 7 }
  0x1f   : > { %v255_v10 = vsel %vm1030_vm8, %v250_v3, %v254_v53  ;;  %v277_v11 = vor.u32 %v276_v4, %v273_v62  ;;  %v572_v13 = vrot.slane %v570_v5, 6  ;;  %v475_v41 = vcombine.low %v987_v16, %v990_v18 }
  0x20   : > { %v293_v17 = vcombine.low %v241_v2, %v255_v10  ;;  %v575_v19 = vrot.slane %v573_v8, 7  ;;  %v269_v20 = vsel %vm1030_vm8, %v264_v7, %v268_v59  ;;  %v581_v25 = vrot.slane %v579_v9, 7 }
  0x21   : > { %862 = vmatpush3.bf16.msra.mxu1 %v895_v51  ;;  %v278_v22 = vrot.slane %v277_v11, 2  ;;  %v592_v27 = vcombine.low %v255_v10, %v269_v20  ;;  %v482_v43 = vrot.slane %v474_v40, %v995_v21  ;;  %v489_v44 = vrot.slane %v475_v41, %v995_v21 }
  0x22   : > { %863 = vmatprep.subr.bf16.mxu1 %v911_v1  ;;  %v576_v24 = vor.u32 %v575_v19, %v572_v13  ;;  %v301_v29 = vrot.slane %v293_v17, %v995_v21 }
  0x23   : > { %v283_v26 = vsel %vm1030_vm8, %v278_v22, %v282_v12  ;;  %v600_v35 = vrot.slane %v592_v27, %v995_v21  ;;  %v490_v14 = vcombine.low %v482_v43, %v489_v44 }
  0x24   : > { %v294_v28 = vcombine.low %v269_v20, %v283_v26  ;;  %v577_v30 = vrot.slane %v576_v24, 2 }
  0x25   : > { %864 = vmatpush3.bf16.msra.mxu1 %v897_v6 }
  0x26   : > { %865 = vmatprep.subr.bf16.mxu1 %v911_v1  ;;  %v308_v31 = vrot.slane %v294_v28, %v995_v21  ;;  %v582_v32 = vsel %vm1030_vm8, %v577_v30, %v581_v25 }
  0x27   : > { %v593_v33 = vcombine.low %v283_v26, %v582_v32 }
  0x28   : > { %v309_v36 = vcombine.low %v301_v29, %v308_v31 }
  0x29   : > { %866 = vmatpush3.bf16.msra.mxu1 %v899_v23  ;;  %v607_v37 = vrot.slane %v593_v33, %v995_v21 }
  0x2a   : > { %832 = vmatmul.mubr.msk.bf16.vlgmr.msra.gmra.mxu0 %vm334_vm3, %v309_v36 }
  0x2b   : > { %848 = vmatpush3.bf16.msra.mxu0 %v894_v34  ;;  %v608_v39 = vcombine.low %v600_v35, %v607_v37  ;;  %855 = vmatprep.mubr.msk.bf16.mxu0 %vm912_vm0, %v911_v1 }
  0x2c   : > { %849 = vmatprep.subr.bf16.mxu0 %v911_v1 }
  0x2d   : > { %868 = vmatmul.mubr.msk.bf16.vlgmr.msra.gmra.mxu1 %vm334_vm3, %v608_v39 }
  0x2f   : > { %850 = vmatpush3.bf16.msra.mxu0 %v896_v38 }
  0x30   : > { %851 = vmatprep.subr.bf16.mxu0 %v911_v1 }
  0x33   : > { %852 = vmatpush3.bf16.msra.mxu0 %v898_v42 }
  0x34   : > { %853 = vmatprep.subr.bf16.mxu0 %v911_v1 }
  0x37   : > { %854 = vmatpush3.bf16.msra.mxu0 %v900_v45 }
  0x3a   : > { %856 = vmatmul.mubr.msk.bf16.vlgmr.msra.gmra.mxu0 %vm334_vm3, %v490_v14 }
  0xdc   : > { %v457_v15 = vpop.f32.mrf.mxu1 }
  0xde   : > { %v845_v16 = vpop.f32.mrf.mxu1 }
  0xe0   : > { %v460_v18 = vpop.f32.mrf.mxu1 }
  0xe2   : > { %v846_v46 = vpop.f32.mrf.mxu1 }
  0xea   : > { %v372_v47 = vpop.f32.mrf.mxu0 }
  0xeb   : > { %v458_v54 = vadd.f32 %v457_v15, %v372_v47 }
  0xec   : > { %v833_v48 = vpop.f32.mrf.mxu0 }
  0xed   : > { %v670_v49 = vpop.f32.mrf.mxu1 }
  0xee   : > { %v375_v21 = vpop.f32.mrf.mxu0 }
  0xef   : > { %v869_v50 = vpop.f32.mrf.mxu1  ;;  %v461_v58 = vadd.f32 %v460_v18, %v375_v21 }
  0xf0   : > { %v834_v51 = vpop.f32.mrf.mxu0 }
  0xf1   : > { %v673_v52 = vpop.f32.mrf.mxu1 }
  0xf3   : > { %v870_v53 = vpop.f32.mrf.mxu1 }
  0xfa   : > { %v552_v55 = vpop.f32.mrf.mxu0 }
  0xfb   : > { %v559_v1 = vadd.f32 %v552_v55, %v458_v54 }
  0xfc   : > { %v857_v57 = vpop.f32.mrf.mxu0 }
  0xfd   : > { %v677_v59 = vadd.f32 %v670_v49, %v559_v1 }
  0xfe   : > { %v555_v60 = vpop.f32.mrf.mxu0 }
  0xff   : > { %v686_v61 = vadd.f32 %v799_v56, %v677_v59  ;;  %v560_v62 = vadd.f32 %v555_v60, %v461_v58 }
 0x100   : > { %v858_v63 = vpop.f32.mrf.mxu0 }
 0x101   : > { %v688_v0 = vmax.f32 %v686_v61, 0.0  ;;  %v678_v2 = vadd.f32 %v673_v52, %v560_v62 }
 0x103   : > { %690 = vst [vmem:[%s170_s30] sm:$0xff] %v688_v0  ;;  %v687_v3 = vadd.f32 %v799_v56, %v678_v2 }
 0x105   : > { %v689_v4 = vmax.f32 %v687_v3, 0.0 }
 0x107   : > { %691 = vst [vmem:[%s170_s30 + $0x8] sm:$0xff] %v689_v4 }
 0x108 PF: > { %s13_s12 = sadd.s32 1, %s909_s12  }
 0x109   : > { %p10_p4 = scmp.ge.s32.totalorder %s13_s12, 4  }
 0x10b   :  { %12 = sbr.rel (!%p10_p4) target bundleno = 1 (0x1), region = 65 }

// kernel: _lambda_.7
= control target key start
LH: loop header
LB: loop body
LE: loop exit
PB: predicated region body
PF: predicated region fallthrough
CT: control target
= control target key end

     0   :  { %s1074_s12 = smov 0   ;;  %s1267_s0 = inlined_call_operand.vmem [shape: bf16[2,3,3,128], index: 0, kind: input, shape index: {}]   ;;  %s1268_s1 = inlined_call_operand.vmem [shape: bf16[4,128,128], index: 1, kind: input, shape index: {}]   ;;  %s1269_s2 = inlined_call_operand.vmem [shape: f32[1,128], index: 2, kind: input, shape index: {}]   ;;  %s1270_s3 = inlined_call_operand.vmem [shape: f32[2,4,128], index: 3, kind: output, shape index: {}]  }
   0x1 LB: > { %s790_s13 = sadd.s32 4294967295, %s1049_s12   ;;  %p794_p0 = scmp.ge.s32.totalorder %s1049_s12, 1  ;;  %s1049_s12 = sphi %s1074_s12, %s13_s12  }
   0x2   : > { %p137_p1 = scmp.lt.s32.totalorder %s1049_s12, 3 }
   0x4   : > { %p138_p2 = pnand %p794_p0, %p137_p1 }
   0x5   : > { %p160_p3 = scmp.lt.s32.totalorder (!%p138_p2), %s790_s13, 1 }
   0x6   : > { %141 = sbr.rel (%p138_p2) target bundleno = 278 (0x116), region = 32 }
   0xb   : > { %v1011_v0 = vld [vmem:[%s1268_s1 + $0x78] sm:$0xff]   ;;  %v1051_v1 = vmov 0.0   ;;  %v1013_v3 = vld [vmem:[%s1268_s1 + $0x70] sm:$0xff]   ;;  %vm1052_vm0 = vmmov 0   ;;  %v1015_v5 = vld [vmem:[%s1268_s1 + $0x68] sm:$0xff]   ;;  %s1274_s13 = smov (!%p160_p3, %s790_s13), 1  ;;  %v194_v9 = vlaneseq }
   0xc   : > { %919 = vmatprep.subr.bf16.mxu0 %v1051_v1  ;;  %939 = vmatprep.subr.bf16.mxu1 %v1051_v1  ;;  %v1012_v2 = vld [vmem:[%s1268_s1 + $0x38] sm:$0xff]   ;;  %v1014_v4 = vld [vmem:[%s1268_s1 + $0x30] sm:$0xff]   ;;  %v1016_v6 = vld [vmem:[%s1268_s1 + $0x28] sm:$0xff]   ;;  %s999_s30 = smul.u32 6, %s1274_s13  ;;  %vm207_vm1 = vsmask.f32 256 }
   0xd   : > { %920 = vmatpush3.bf16.msra.mxu0 %v1011_v0  ;;  %935 = vmatprep.mubr.msk.bf16.mxu0 %vm1052_vm0, %v1051_v1  ;;  %v1017_v7 = vld [vmem:[%s1268_s1 + $0x60] sm:$0xff]   ;;  %v1019_v10 = vld [vmem:[%s1268_s1 + $0x58] sm:$0xff]   ;;  %v1021_v12 = vld [vmem:[%s1268_s1 + $0x50] sm:$0xff]   ;;  %v195_v13 = vshrl.u32 %v194_v9, 7  ;;  %vm208_vm2 = vsmask.f32 1284 }
   0xe   : > { %940 = vmatpush3.bf16.msra.mxu1 %v1012_v2  ;;  %921 = vmatprep.subr.bf16.mxu0 %v1051_v1  ;;  %v1018_v8 = vld [vmem:[%s1268_s1 + $0x20] sm:$0xff]   ;;  %v1020_v11 = vld [vmem:[%s1268_s1 + $0x18] sm:$0xff]   ;;  %s1135_s14 = scalar_lea.vmem %s1267_s0, %s999_s30  ;;  %v1022_v14 = vld [vmem:[%s1268_s1 + $0x10] sm:$0xff]   ;;  %v1053_v15 = vmov 1966171168   ;;  %s796_s7 = sshll.u32 %s1274_s13, 2 }
   0xf   : > { %941 = vmatprep.subr.bf16.mxu1 %v1051_v1  ;;  %955 = vmatprep.mubr.msk.bf16.mxu1 %vm1052_vm0, %v1051_v1  ;;  %v192_v16 = vunpack.c.l.s4 %v1053_v15  ;;  %vm209_vm3 = vmor %vm207_vm1, %vm208_vm2  ;;  %vm210_vm4 = vsmask.f32 2312  ;;  %vm212_vm5 = vsmask.f32 3340  ;;  %vm214_vm6 = vsmask.f32 4368  ;;  %s168_s10 = scalar_lea.vmem %s1270_s3, %s796_s7 }
  0x10   : > { %v170_v17 = vld [vmem:[%s1135_s14] sm:$0x3]  ;;  %v1143_v18 = vld [vmem:[%s1135_s14 + $0x2] sm:$0x3]  ;;  %vm211_vm7 = vmor %vm209_vm3, %vm210_vm4  ;;  %vm216_vm8 = vsmask.f32 5396 }
  0x11   : > { %922 = vmatpush3.bf16.msra.mxu0 %v1013_v3  ;;  %v193_v19 = vunpack.c.0.s8 %v192_v16  ;;  %vm213_vm9 = vmor %vm211_vm7, %vm212_vm5  ;;  %vm218_vm11 = vsmask.f32 6424  ;;  %v361_v20 = vcombine.low %v170_v17, %v1143_v18  ;;  %v1023_v21 = vld [vmem:[%s1268_s1 + $0x48] sm:$0xff]   ;;  %vm220_vm14 = vsmask.f32 7452  ;;  %v1025_v27 = vld [vmem:[%s1268_s1 + $0x40] sm:$0xff]  }
  0x12   : > { %942 = vmatpush3.bf16.msra.mxu1 %v1014_v4  ;;  %923 = vmatprep.subr.bf16.mxu0 %v1051_v1  ;;  %vm215_vm10 = vmor %vm213_vm9, %vm214_vm6  ;;  %v1024_v23 = vld [vmem:[%s1268_s1 + $0x8] sm:$0xff]   ;;  %v1026_v28 = vld [vmem:[%s1268_s1] sm:$0xff]  }
  0x13   : > { %943 = vmatprep.subr.bf16.mxu1 %v1051_v1  ;;  %v1150_v22 = vsub.s32 %v193_v19, %v195_v13  ;;  %vm217_vm12 = vmor %vm215_vm10, %vm216_vm8  ;;  %v1028_v40 = vld [vmem:[%s1268_s1 + $0xf8] sm:$0xff]   ;;  %v1030_v44 = vld [vmem:[%s1268_s1 + $0xf0] sm:$0xff]  }
  0x14   : > { %vm219_vm13 = vmor %vm217_vm12, %vm218_vm11  ;;  %v1027_v42 = vld [vmem:[%s1268_s1 + $0xb8] sm:$0xff]   ;;  %v172_v45 = vld [vmem:[%s1135_s14 + $0x4] sm:$0x3] }
  0x15   : > { %924 = vmatpush3.bf16.msra.mxu0 %v1015_v5  ;;  %v197_v24 = vrot.slane %v170_v17, %v1150_v22  ;;  %v205_v25 = vrot.slane %v1143_v18, %v1150_v22  ;;  %v368_v26 = vrot.slane %v361_v20, %v1150_v22  ;;  %vm1168_vm15 = vmor %vm219_vm13, %vm220_vm14  ;;  %v1029_v46 = vld [vmem:[%s1268_s1 + $0xb0] sm:$0xff]   ;;  %v594_v47 = vrot.slane %v172_v45, %v1150_v22  ;;  %v1032_v48 = vld [vmem:[%s1268_s1 + $0xe8] sm:$0xff]  }
  0x16   : > { %944 = vmatpush3.bf16.msra.mxu1 %v1016_v6  ;;  %925 = vmatprep.subr.bf16.mxu0 %v1051_v1  ;;  %v1031_v49 = vld [vmem:[%s1268_s1 + $0xa8] sm:$0xff]   ;;  %v1034_v51 = vld [vmem:[%s1268_s1 + $0xe0] sm:$0xff]   ;;  %v1036_v55 = vld [vmem:[%s1268_s1 + $0xd8] sm:$0xff]   ;;  %v483_v62 = vcombine.low %v1143_v18, %v172_v45 }
  0x17   : > { %945 = vmatprep.subr.bf16.mxu1 %v1051_v1  ;;  %v198_v29 = vcombine.high %v197_v24, %v197_v24  ;;  %v206_v30 = vcombine.high %v205_v25, %v205_v25  ;;  %v223_v31 = vshrl.u32 %v197_v24, 16  ;;  %v232_v32 = vshrl.u32 %v205_v25, 16  ;;  %v1033_v52 = vld [vmem:[%s1268_s1 + $0xa0] sm:$0xff]   ;;  %v1035_v56 = vld [vmem:[%s1268_s1 + $0x98] sm:$0xff]   ;;  %v1038_v58 = vld [vmem:[%s1268_s1 + $0xd0] sm:$0xff]  }
  0x18   : > { %v375_v38 = vrot.slane %v368_v26, %v1150_v22  ;;  %v595_v50 = vcombine.high %v594_v47, %v594_v47  ;;  %v597_v53 = vshrl.u32 %v594_v47, 16  ;;  %v1037_v60 = vld [vmem:[%s1268_s1 + $0x90] sm:$0xff]   ;;  %v1040_v61 = vld [vmem:[%s1268_s1 + $0xc8] sm:$0xff]   ;;  %v1042_v2 = vld [vmem:[%s1268_s1 + $0xc0] sm:$0xff]   ;;  %v490_v3 = vrot.slane %v483_v62, %v1150_v22 }
  0x19   : > { %926 = vmatpush3.bf16.msra.mxu0 %v1017_v7  ;;  %v228_v34 = vshll.u32 %v198_v29, 16  ;;  %v237_v35 = vshll.u32 %v206_v30, 16  ;;  %v1039_v63 = vld [vmem:[%s1268_s1 + $0x88] sm:$0xff]   ;;  %v1041_v4 = vld [vmem:[%s1268_s1 + $0x80] sm:$0xff]  }
  0x1a   : > { %946 = vmatpush3.bf16.msra.mxu1 %v1018_v8  ;;  %927 = vmatprep.subr.bf16.mxu0 %v1051_v1  ;;  %v602_v54 = vshll.u32 %v595_v50, 16  ;;  %v497_v6 = vrot.slane %v490_v3, %v1150_v22  ;;  %v880_v20 = vld [vmem:[%s1269_s2] ss:$0 sm:$0xff] }
  0x1b   : > { %947 = vmatprep.subr.bf16.mxu1 %v1051_v1  ;;  %v230_v36 = vsel %vm1168_vm15, %v223_v31, %v228_v34  ;;  %v239_v37 = vsel %vm1168_vm15, %v232_v32, %v237_v35 }
  0x1c   : > { %v257_v39 = vcombine.low %v230_v36, %v239_v37  ;;  %v604_v57 = vsel %vm1168_vm15, %v597_v53, %v602_v54 }
  0x1d   : > { %928 = vmatpush3.bf16.msra.mxu0 %v1019_v10  ;;  %v622_v59 = vcombine.low %v239_v37, %v604_v57 }
  0x1e   : > { %948 = vmatpush3.bf16.msra.mxu1 %v1020_v11  ;;  %929 = vmatprep.subr.bf16.mxu0 %v1051_v1  ;;  %v264_v41 = vrot.slane %v257_v39, %v1150_v22 }
  0x1f   : > { %949 = vmatprep.subr.bf16.mxu1 %v1051_v1  ;;  %v629_v0 = vrot.slane %v622_v59, %v1150_v22 }
  0x20   : > { %v271_v43 = vrot.slane %v264_v41, %v1150_v22 }
  0x21   : > { %930 = vmatpush3.bf16.msra.mxu0 %v1021_v12  ;;  %v636_v5 = vrot.slane %v629_v0, %v1150_v22 }
  0x22   : > { %950 = vmatpush3.bf16.msra.mxu1 %v1022_v14  ;;  %931 = vmatprep.subr.bf16.mxu0 %v1051_v1 }
  0x23   : > { %951 = vmatprep.subr.bf16.mxu1 %v1051_v1 }
  0x25   : > { %932 = vmatpush3.bf16.msra.mxu0 %v1023_v21 }
  0x26   : > { %952 = vmatpush3.bf16.msra.mxu1 %v1024_v23  ;;  %933 = vmatprep.subr.bf16.mxu0 %v1051_v1 }
  0x27   : > { %953 = vmatprep.subr.bf16.mxu1 %v1051_v1 }
  0x29   : > { %934 = vmatpush3.bf16.msra.mxu0 %v1025_v27 }
  0x2a   : > { %954 = vmatpush3.bf16.msra.mxu1 %v1026_v28  ;;  %959 = vmatprep.subr.bf16.mxu0 %v1051_v1 }
  0x2b   : > { %979 = vmatprep.subr.bf16.mxu1 %v1051_v1 }
  0x2c   : > { %936 = vmatmul.mubr.bf16.vlgmr.msra.gmra.mxu0 %v271_v43 }
  0x2d   : > { %956 = vmatmul.mubr.bf16.vlgmr.msra.gmra.mxu1 %v375_v38  ;;  %960 = vmatpush3.bf16.msra.mxu0 %v1027_v42 }
  0x2e   : > { %980 = vmatpush3.bf16.msra.mxu1 %v1028_v40  ;;  %995 = vmatprep.mubr.msk.bf16.mxu1 %vm1052_vm0, %v1051_v1 }
  0x2f   : > { %981 = vmatprep.subr.bf16.mxu1 %v1051_v1  ;;  %975 = vmatprep.mubr.msk.bf16.mxu0 %vm1052_vm0, %v1051_v1 }
  0x30   : > { %961 = vmatprep.subr.bf16.mxu0 %v1051_v1 }
  0x31   : > { %962 = vmatpush3.bf16.msra.mxu0 %v1029_v46 }
  0x32   : > { %982 = vmatpush3.bf16.msra.mxu1 %v1030_v44  ;;  %963 = vmatprep.subr.bf16.mxu0 %v1051_v1 }
  0x33   : > { %983 = vmatprep.subr.bf16.mxu1 %v1051_v1 }
  0x35   : > { %964 = vmatpush3.bf16.msra.mxu0 %v1031_v49 }
  0x36   : > { %984 = vmatpush3.bf16.msra.mxu1 %v1032_v48  ;;  %965 = vmatprep.subr.bf16.mxu0 %v1051_v1 }
  0x37   : > { %985 = vmatprep.subr.bf16.mxu1 %v1051_v1 }
  0x39   : > { %966 = vmatpush3.bf16.msra.mxu0 %v1033_v52 }
  0x3a   : > { %986 = vmatpush3.bf16.msra.mxu1 %v1034_v51  ;;  %967 = vmatprep.subr.bf16.mxu0 %v1051_v1 }
  0x3b   : > { %987 = vmatprep.subr.bf16.mxu1 %v1051_v1 }
  0x3d   : > { %968 = vmatpush3.bf16.msra.mxu0 %v1035_v56 }
  0x3e   : > { %988 = vmatpush3.bf16.msra.mxu1 %v1036_v55  ;;  %969 = vmatprep.subr.bf16.mxu0 %v1051_v1 }
  0x3f   : > { %989 = vmatprep.subr.bf16.mxu1 %v1051_v1 }
  0x41   : > { %970 = vmatpush3.bf16.msra.mxu0 %v1037_v60 }
  0x42   : > { %990 = vmatpush3.bf16.msra.mxu1 %v1038_v58  ;;  %971 = vmatprep.subr.bf16.mxu0 %v1051_v1 }
  0x43   : > { %991 = vmatprep.subr.bf16.mxu1 %v1051_v1 }
  0x45   : > { %972 = vmatpush3.bf16.msra.mxu0 %v1039_v63 }
  0x46   : > { %992 = vmatpush3.bf16.msra.mxu1 %v1040_v61  ;;  %973 = vmatprep.subr.bf16.mxu0 %v1051_v1 }
  0x47   : > { %993 = vmatprep.subr.bf16.mxu1 %v1051_v1 }
  0x49   : > { %974 = vmatpush3.bf16.msra.mxu0 %v1041_v4 }
  0x4a   : > { %994 = vmatpush3.bf16.msra.mxu1 %v1042_v2 }
  0x4c   : > { %976 = vmatmul.mubr.bf16.vlgmr.msra.gmra.mxu0 %v497_v6 }
  0x4d   : > { %996 = vmatmul.mubr.bf16.vlgmr.msra.gmra.mxu1 %v636_v5 }
  0xec   : > { %v355_v9 = vpop.f32.mrf.mxu0 }
  0xed   : > { %v459_v7 = vpop.f32.mrf.mxu1 }
  0xee   : > { %v937_v11 = vpop.f32.mrf.mxu0  ;;  %v460_v16 = vadd.f32 %v459_v7, %v355_v9 }
  0xef   : > { %v957_v8 = vpop.f32.mrf.mxu1 }
  0xf0   : > { %v358_v13 = vpop.f32.mrf.mxu0 }
  0xf1   : > { %v462_v10 = vpop.f32.mrf.mxu1 }
  0xf2   : > { %v938_v14 = vpop.f32.mrf.mxu0 }
  0xf3   : > { %v958_v12 = vpop.f32.mrf.mxu1 }
 0x10c   : > { %v581_v18 = vpop.f32.mrf.mxu0 }
 0x10d   : > { %v720_v15 = vpop.f32.mrf.mxu1  ;;  %v587_v1 = vadd.f32 %v581_v18, %v460_v16 }
 0x10e   : > { %v977_v21 = vpop.f32.mrf.mxu0 }
 0x10f   : > { %v997_v17 = vpop.f32.mrf.mxu1  ;;  %v726_v22 = vadd.f32 %v720_v15, %v587_v1 }
 0x110   : > { %v584_v24 = vpop.f32.mrf.mxu0 }
 0x111   : > { %v723_v19 = vpop.f32.mrf.mxu1  ;;  %v734_v25 = vadd.f32 %v880_v20, %v726_v22 }
 0x112   : > { %v978_v26 = vpop.f32.mrf.mxu0 }
 0x113   : > { %v998_v23 = vpop.f32.mrf.mxu1  ;;  %v735_v27 = vmax.f32 %v734_v25, 0.0 }
 0x115   : > { %736 = vst [vmem:[%s168_s10] sm:$0xf] %v735_v27 }
 0x116 PF: > { %s13_s12 = sadd.s32 1, %s1049_s12  }
 0x117   : > { %p10_p4 = scmp.ge.s32.totalorder %s13_s12, 4  }
 0x119   :  { %12 = sbr.rel (!%p10_p4) target bundleno = 1 (0x1), region = 65 }

</bundles_post_ra>
